<compile_context>
chip_gen: v6e
topology: v6e:2x2x1
jax: 0.10.0
libtpu: 0.0.40
codegen_flags: <defaults>
</compile_context>

<pallas_src>
from functools import partial

import jax
import jax.numpy as jnp
from jax.experimental import pallas as pl
from jax.experimental.pallas import tpu as pltpu

# ----------------------------- model hyper-params (small, synthetic) ---------
B_SZ = 2          # batch
F_MEL = 64        # mel bins (ATST uses 64)
T_FRAMES = 32     # time frames (real ATST: 1001 -> fake_length; scaled down)
PATCH_T = 4       # time patch width (ATST frame patch = 64 x 4)
EMBED_D = 32      # embed dim  (real: 768)
NUM_HEADS = 4     # heads      (real: 12)
HEAD_D = EMBED_D // NUM_HEADS
DEPTH = 2         # blocks     (real: 12)
MLP_D = 4 * EMBED_D          # lane-dense MLP hidden
EPS = 1e-6
N_PATCH = T_FRAMES // PATCH_T
PATCH_DIM = F_MEL * PATCH_T

# MXU-native bf16 for all weight matmuls; f32 accumulation is kept via
# preferred_element_type.  Attention score / PV matmuls stay f32 (activation
# only, tiny at these sizes).
MM_DTYPE = jnp.bfloat16


def _mm(a, b):
    """Weight matmul: bf16 MXU inputs, f32 accumulation."""
    return jnp.dot(a.astype(MM_DTYPE), b.astype(MM_DTYPE),
                   preferred_element_type=jnp.float32)


def _mm_f32(a, b):
    return jnp.dot(a, b, preferred_element_type=jnp.float32)


def _mm_nt_f32(a, b):
    # a @ b.T without an explicit in-kernel transpose.
    return jax.lax.dot_general(a, b, (((1,), (1,)), ((), ())),
                               preferred_element_type=jnp.float32)


def _gelu_tanh(x):
    # TODO(synk): PyTorch nn.GELU defaults to the exact erf form; tanh approx
    # is used to guarantee Mosaic lowering (<1e-3 relative difference).
    c = 0.7978845608028654  # sqrt(2/pi)
    return 0.5 * x * (1.0 + jnp.tanh(c * (x + 0.044715 * x * x * x)))


def _layer_norm(x, g, b, eps):
    mu = jnp.mean(x, axis=-1, keepdims=True)
    var = jnp.mean(jnp.square(x - mu), axis=-1, keepdims=True)
    return (x - mu) * jax.lax.rsqrt(var + eps) * g + b


# ----------------------------- fused, layer-streamed Pallas kernel -----------
def _atst_layer_kernel(plen_ref, p_ref,
                       wp_ref, bp_ref, pos_ref,
                       ln1g_ref, ln1b_ref,
                       wqkv_ref, bqkv_ref, wo_ref, bo_ref,
                       ln2g_ref, ln2b_ref,
                       w1_ref, b1_ref, w2_ref, b2_ref,
                       ng_ref, nb_ref,
                       o_ref,
                       x_ref, bias_ref,
                       *, depth, num_heads, n_last, eps):
    # Grid = (batch, layer).  One invocation = one transformer block for one
    # batch element; x_ref (VMEM scratch) carries activations across layers.
    b = pl.program_id(0)
    l = pl.program_id(1)
    N, D = x_ref.shape
    hd = D // num_heads
    scale = float(hd) ** -0.5

    @pl.when(l == 0)
    def _init():
        # Patch embed (== conv2d kernel=(F,PT), stride=(F,PT)) + pos embed.
        x_ref[...] = _mm(p_ref[0], wp_ref[...]) + bp_ref[...] + pos_ref[...]
        # Key-padding additive bias from the scalar-prefetched patch length,
        # materialized once per batch element (hoisted out of the layer loop).
        col = jax.lax.broadcasted_iota(jnp.int32, (N, N), 1)
        bias_ref[...] = jnp.where(col < plen_ref[b], 0.0, -1e9).astype(jnp.float32)

    x = x_ref[...]
    bias = bias_ref[...]

    # ---- MHSA (pre-LN) ----
    h = _layer_norm(x, ln1g_ref[0], ln1b_ref[0], eps)
    qkv = _mm(h, wqkv_ref[0]) + bqkv_ref[0]                    # (N, 3D) f32
    ctx_parts = []
    for hh in range(num_heads):            # static loop over heads only (small)
        lo = hh * hd
        q = qkv[:, lo:lo + hd]
        k = qkv[:, D + lo:D + lo + hd]
        v = qkv[:, 2 * D + lo:2 * D + lo + hd]
        s = _mm_nt_f32(q, k) * scale + bias                    # (N, N)
        s = s - jnp.max(s, axis=-1, keepdims=True)
        e = jnp.exp(s)
        p_attn = e * pl.reciprocal(jnp.sum(e, axis=-1, keepdims=True),
                                   approx=True)
        ctx_parts.append(_mm_f32(p_attn, v))                   # (N, hd)
    ctx = jnp.concatenate(ctx_parts, axis=-1)                  # (N, D)
    # Single full-width output projection (replaces per-head proj + accumulate).
    x = x + _mm(ctx, wo_ref[0]) + bo_ref[0]

    # ---- MLP (pre-LN) ----
    h2 = _layer_norm(x, ln2g_ref[0], ln2b_ref[0], eps)
    m = _gelu_tanh(_mm(h2, w1_ref[0]) + b1_ref[0])
    x = x + _mm(m, w2_ref[0]) + b2_ref[0]

    x_ref[...] = x                         # carry to next layer grid step

    # ---- norm_frame on the last n blocks: one full (N, D) slab store ----
    @pl.when(l >= depth - n_last)
    def _write():
        o_ref[0, 0] = _layer_norm(x, ng_ref[...], nb_ref[...], eps)


# ----------------------------- forward wrapper --------------------------------
def atst_forward(atst_feat, lengths, params, n=1, other_emb=None):
    """atst_feat: [B, F, T] float32, lengths: [B] int32 frame counts."""
    # TODO(synk): other_emb injection path of get_intermediate_layers is not
    # exercised (other_emb=None in this synthetic setup).
    del other_emb
    B, F, T = atst_feat.shape
    N = T // PATCH_T
    D = EMBED_D
    n = max(1, min(n, DEPTH))

    # unsqueeze(1) + conv2d(kernel=(F,PT), stride=(F,PT)) == per-patch linear;
    # patches flattened freq-major, time-minor (matches conv weight flatten).
    patches = atst_feat.reshape(B, F, N, PATCH_T)
    patches = jnp.transpose(patches, (0, 2, 1, 3)).reshape(B, N, F * PATCH_T)

    # fake_length analogue -> per-batch valid patch count (scalar prefetch).
    patch_len = jnp.clip((lengths + PATCH_T - 1) // PATCH_T, 0, N).astype(jnp.int32)

    # bf16 storage for the streamed matmul weights (halves per-layer DMA);
    # biases / LN params / pos embed stay f32 (added in f32).
    bf = lambda a: a.astype(MM_DTYPE)
    w_patch, w_qkv = bf(params["w_patch"]), bf(params["w_qkv"])
    w_o, w1, w2 = bf(params["w_o"]), bf(params["w1"]), bf(params["w2"])

    def const_spec(a):      # grid-invariant: fetched once, stays resident
        nd = a.ndim
        return pl.BlockSpec(a.shape, lambda b_, l_, plen_, nd_=nd: (0,) * nd_)

    def layer_spec(a):      # streamed per layer along the depth grid axis
        nd = a.ndim
        return pl.BlockSpec((1,) + a.shape[1:],
                            lambda b_, l_, plen_, nd_=nd: (l_,) + (0,) * (nd_ - 1))

    weight_arrays = (
        (w_patch, const_spec), (params["b_patch"], const_spec),
        (params["pos"], const_spec),
        (params["ln1_g"], layer_spec), (params["ln1_b"], layer_spec),
        (w_qkv, layer_spec), (params["b_qkv"], layer_spec),
        (w_o, layer_spec), (params["b_o"], layer_spec),
        (params["ln2_g"], layer_spec), (params["ln2_b"], layer_spec),
        (w1, layer_spec), (params["b1"], layer_spec),
        (w2, layer_spec), (params["b2"], layer_spec),
        (params["norm_g"], const_spec), (params["norm_b"], const_spec),
    )
    weights = tuple(a for a, _ in weight_arrays)
    weight_specs = [mk(a) for a, mk in weight_arrays]

    in_specs = ([pl.BlockSpec((1, N, F * PATCH_T),
                              lambda b_, l_, plen_: (b_, 0, 0))]
                + weight_specs)
    # Output (B, n, N, D): each of the last n layers owns its own full (N, D)
    # block (lane-dense at real D); earlier layers map to block 0 (unwritten).
    out_spec = pl.BlockSpec(
        (1, 1, N, D),
        lambda b_, l_, plen_: (b_, jnp.maximum(l_ - (DEPTH - n), 0), 0, 0))

    # Advisory cost estimate so XLA overlaps neighbouring ops with the kernel.
    flops_layer = (2 * N * D * 3 * D            # qkv proj
                   + 2 * N * N * D * 2          # scores + PV (all heads)
                   + 2 * N * D * D              # out proj
                   + 2 * N * D * MLP_D * 2)     # MLP
    flops = B * (2 * N * PATCH_DIM * D + DEPTH * flops_layer)
    transcendentals = B * DEPTH * (NUM_HEADS * N * N + N * MLP_D)
    bytes_accessed = (patches.size * 4
                      + B * sum(int(w.size) * w.dtype.itemsize for w in weights)
                      + B * n * N * D * 4)

    kernel = partial(_atst_layer_kernel, depth=DEPTH, num_heads=NUM_HEADS,
                     n_last=n, eps=EPS)

    out = pl.pallas_call(
        kernel,
        out_shape=jax.ShapeDtypeStruct((B, n, N, D), jnp.float32),
        grid_spec=pltpu.PrefetchScalarGridSpec(
            num_scalar_prefetch=1,
            grid=(B, DEPTH),
            in_specs=in_specs,
            out_specs=out_spec,
            scratch_shapes=[pltpu.VMEM((N, D), jnp.float32),   # x carry
                            pltpu.VMEM((N, N), jnp.float32)],  # key-pad bias
        ),
        compiler_params=pltpu.CompilerParams(
            dimension_semantics=("parallel", "arbitrary"),
            # Sized against v7x's 64 MiB physical VMEM (headroom kept since the
            # toy tiles are tiny; raise the scoped default above 32 MiB anyway).
            vmem_limit_bytes=64 * 1024 * 1024),
        cost_estimate=pl.CostEstimate(flops=flops,
                                      transcendentals=transcendentals,
                                      bytes_accessed=bytes_accessed),
    )(patch_len, patches, *weights)

    # (B, n, N, D) -> (B, N, n*D): concat along feature dim, as in
    # get_intermediate_layers(..., scene=False).
    return jnp.transpose(out, (0, 2, 1, 3)).reshape(B, N, n * D)


# ----------------------------- pure-JAX reference -----------------------------
def _reference_forward(atst_feat, lengths, params, n=1):
    B, F, T = atst_feat.shape
    N = T // PATCH_T
    D = EMBED_D
    n = max(1, min(n, DEPTH))
    patches = atst_feat.reshape(B, F, N, PATCH_T)
    patches = jnp.transpose(patches, (0, 2, 1, 3)).reshape(B, N, F * PATCH_T)
    x = patches @ params["w_patch"] + params["b_patch"] + params["pos"]
    patch_len = jnp.clip((lengths + PATCH_T - 1) // PATCH_T, 0, N)
    valid = jnp.arange(N)[None, :] < patch_len[:, None]
    bias = jnp.where(valid, 0.0, -1e9)[:, None, None, :]               # (B,1,1,N)

    def ln(v, g, b):
        mu = v.mean(-1, keepdims=True)
        var = ((v - mu) ** 2).mean(-1, keepdims=True)
        return (v - mu) * jax.lax.rsqrt(var + EPS) * g + b

    outs = []
    for li in range(DEPTH):
        h = ln(x, params["ln1_g"][li], params["ln1_b"][li])
        qkv = h @ params["w_qkv"][li] + params["b_qkv"][li]
        q, k, v = qkv[..., :D], qkv[..., D:2 * D], qkv[..., 2 * D:]
        q = q.reshape(B, N, NUM_HEADS, HEAD_D).transpose(0, 2, 1, 3)
        k = k.reshape(B, N, NUM_HEADS, HEAD_D).transpose(0, 2, 1, 3)
        v = v.reshape(B, N, NUM_HEADS, HEAD_D).transpose(0, 2, 1, 3)
        s = jnp.einsum("bhnd,bhmd->bhnm", q, k) * (HEAD_D ** -0.5) + bias
        p = jax.nn.softmax(s, axis=-1)
        ctx = jnp.einsum("bhnm,bhmd->bhnd", p, v)
        ctx = ctx.transpose(0, 2, 1, 3).reshape(B, N, D)
        x = x + ctx @ params["w_o"][li] + params["b_o"][li]
        h2 = ln(x, params["ln2_g"][li], params["ln2_b"][li])
        m = h2 @ params["w1"][li] + params["b1"][li]
        m = _gelu_tanh(m)
        x = x + m @ params["w2"][li] + params["b2"][li]
        if li >= DEPTH - n:
            outs.append(ln(x, params["norm_g"], params["norm_b"]))
    return jnp.concatenate(outs, axis=-1)


# ----------------------------- deterministic parameter init -------------------
def init_params(key):
    ks = jax.random.split(key, 8)

    def norm(k, shape, scale=0.02):
        return scale * jax.random.normal(k, shape, jnp.float32)

    D = EMBED_D
    return {
        "w_patch": norm(ks[0], (PATCH_DIM, D)),
        "b_patch": jnp.zeros((1, D), jnp.float32),
        "pos": norm(ks[1], (N_PATCH, D)),
        "ln1_g": jnp.ones((DEPTH, 1, D), jnp.float32),
        "ln1_b": jnp.zeros((DEPTH, 1, D), jnp.float32),
        "w_qkv": norm(ks[2], (DEPTH, D, 3 * D)),
        "b_qkv": jnp.zeros((DEPTH, 1, 3 * D), jnp.float32),
        "w_o": norm(ks[3], (DEPTH, D, D)),
        "b_o": jnp.zeros((DEPTH, 1, D), jnp.float32),
        "ln2_g": jnp.ones((DEPTH, 1, D), jnp.float32),
        "ln2_b": jnp.zeros((DEPTH, 1, D), jnp.float32),
        "w1": norm(ks[4], (DEPTH, D, MLP_D)),
        "b1": jnp.zeros((DEPTH, 1, MLP_D), jnp.float32),
        "w2": norm(ks[5], (DEPTH, MLP_D, D)),
        "b2": jnp.zeros((DEPTH, 1, D), jnp.float32),
        "norm_g": jnp.ones((1, D), jnp.float32),
        "norm_b": jnp.zeros((1, D), jnp.float32),
    }


# ----------------------------- main --------------------------------------------
if __name__ == "__main__":
    key = jax.random.PRNGKey(0)
    k_in, k_par = jax.random.split(key)

    atst_feat = jax.random.normal(k_in, (B_SZ, F_MEL, T_FRAMES), jnp.float32)
    # fake_length analogue: full-length recording for every batch element.
    lengths = jnp.full((B_SZ,), T_FRAMES, jnp.int32)

    params = init_params(k_par)

    out = atst_forward(atst_feat, lengths, params, n=1)
    out = jax.block_until_ready(out)

    assert out.shape == (B_SZ, N_PATCH, EMBED_D)
    assert bool(jnp.all(jnp.isfinite(out)))

    ref = _reference_forward(atst_feat, lengths, params, n=1)
    err = float(jnp.max(jnp.abs(out - ref)))
    # Kernel matmul weights are bf16 (MXU-native, f32 accumulation); reference
    # is pure f32.  Tolerance covers bf16 quantization noise on unit-variance
    # LayerNorm outputs; structural bugs would show up as O(1) mismatches.
    assert err < 1e-1, f"kernel/reference mismatch, max abs err = {err}"

    print("KERNEL_OK")
</pallas_src>

<mosaic_0001>
module attributes {stable_mosaic.version = 11 : i64} {
  func.func @_atst_layer_kernel(%arg0: i32, %arg1: i32, %arg2: memref<2xi32, #tpu.memory_space<smem>>, %arg3: memref<1x8x256xf32, #tpu.memory_space<vmem>>, %arg4: memref<256x32xbf16, #tpu.memory_space<vmem>>, %arg5: memref<1x32xf32, #tpu.memory_space<vmem>>, %arg6: memref<8x32xf32, #tpu.memory_space<vmem>>, %arg7: memref<1x1x32xf32, #tpu.memory_space<vmem>>, %arg8: memref<1x1x32xf32, #tpu.memory_space<vmem>>, %arg9: memref<1x32x96xbf16, #tpu.memory_space<vmem>>, %arg10: memref<1x1x96xf32, #tpu.memory_space<vmem>>, %arg11: memref<1x32x32xbf16, #tpu.memory_space<vmem>>, %arg12: memref<1x1x32xf32, #tpu.memory_space<vmem>>, %arg13: memref<1x1x32xf32, #tpu.memory_space<vmem>>, %arg14: memref<1x1x32xf32, #tpu.memory_space<vmem>>, %arg15: memref<1x32x128xbf16, #tpu.memory_space<vmem>>, %arg16: memref<1x1x128xf32, #tpu.memory_space<vmem>>, %arg17: memref<1x128x32xbf16, #tpu.memory_space<vmem>>, %arg18: memref<1x1x32xf32, #tpu.memory_space<vmem>>, %arg19: memref<1x32xf32, #tpu.memory_space<vmem>>, %arg20: memref<1x32xf32, #tpu.memory_space<vmem>>, %arg21: memref<1x1x8x32xf32, #tpu.memory_space<vmem>>, %arg22: memref<8x32xf32, #tpu.memory_space<vmem>>, %arg23: memref<8x8xf32, #tpu.memory_space<vmem>>) attributes {dimension_semantics = [#tpu.dimension_semantics<parallel>, #tpu.dimension_semantics<arbitrary>], iteration_bounds = array<i64: 2, 2>, scalar_prefetch = 1 : i64, scratch_operands = 2 : i64, tpu.core_type = #tpu.core_type<tc>, window_params = [{transform_indices = @transform_0, window_bounds = array<i64: 1, 8, 256>}, {pipeline_mode = #tpu.pipeline_mode<synchronous>, transform_indices = @transform_1, window_bounds = array<i64: 256, 32>}, {pipeline_mode = #tpu.pipeline_mode<synchronous>, transform_indices = @transform_2, window_bounds = array<i64: 1, 32>}, {pipeline_mode = #tpu.pipeline_mode<synchronous>, transform_indices = @transform_3, window_bounds = array<i64: 8, 32>}, {transform_indices = @transform_4, window_bounds = array<i64: 1, 1, 32>}, {transform_indices = @transform_5, window_bounds = array<i64: 1, 1, 32>}, {transform_indices = @transform_6, window_bounds = array<i64: 1, 32, 96>}, {transform_indices = @transform_7, window_bounds = array<i64: 1, 1, 96>}, {transform_indices = @transform_8, window_bounds = array<i64: 1, 32, 32>}, {transform_indices = @transform_9, window_bounds = array<i64: 1, 1, 32>}, {transform_indices = @transform_10, window_bounds = array<i64: 1, 1, 32>}, {transform_indices = @transform_11, window_bounds = array<i64: 1, 1, 32>}, {transform_indices = @transform_12, window_bounds = array<i64: 1, 32, 128>}, {transform_indices = @transform_13, window_bounds = array<i64: 1, 1, 128>}, {transform_indices = @transform_14, window_bounds = array<i64: 1, 128, 32>}, {transform_indices = @transform_15, window_bounds = array<i64: 1, 1, 32>}, {pipeline_mode = #tpu.pipeline_mode<synchronous>, transform_indices = @transform_16, window_bounds = array<i64: 1, 32>}, {pipeline_mode = #tpu.pipeline_mode<synchronous>, transform_indices = @transform_17, window_bounds = array<i64: 1, 32>}, {transform_indices = @transform_18, window_bounds = array<i64: 1, 1, 8, 32>}]} {
    %c0_i32 = arith.constant 0 : i32
    %0 = arith.cmpi eq, %arg1, %c0_i32 : i32
    %1 = arith.extui %0 : i1 to i32
    %c0_i32_0 = arith.constant 0 : i32
    %2 = arith.cmpi ne, %1, %c0_i32_0 : i32
    scf.if %2 {
      %c0_80 = arith.constant 0 : index
      %c0_81 = arith.constant 0 : index
      %c0_82 = arith.constant 0 : index
      %181 = vector.load %arg3[%c0_80, %c0_81, %c0_82] : memref<1x8x256xf32, #tpu.memory_space<vmem>>, vector<1x8x256xf32>
      %182 = vector.shape_cast %181 : vector<1x8x256xf32> to vector<8x256xf32>
      %c0_83 = arith.constant 0 : index
      %c0_84 = arith.constant 0 : index
      %183 = vector.load %arg4[%c0_83, %c0_84] : memref<256x32xbf16, #tpu.memory_space<vmem>>, vector<256x32xbf16>
      %184 = arith.truncf %182 : vector<8x256xf32> to vector<8x256xbf16>
      %cst_85 = arith.constant dense<0.000000e+00> : vector<8x32xf32>
      %185 = tpu.matmul %184, %183, %cst_85 {dimension_numbers = #tpu.dot_dimension_numbers<[1], [0], [0], [1], [0, 0, 1, 1], [], []>} : vector<8x256xbf16>, vector<256x32xbf16>, vector<8x32xf32> -> vector<8x32xf32>
      %c0_86 = arith.constant 0 : index
      %c0_87 = arith.constant 0 : index
      %186 = vector.load %arg5[%c0_86, %c0_87] : memref<1x32xf32, #tpu.memory_space<vmem>>, vector<1x32xf32>
      %187 = vector.broadcast %186 : vector<1x32xf32> to vector<8x32xf32>
      %188 = arith.addf %185, %187 : vector<8x32xf32>
      %c0_88 = arith.constant 0 : index
      %c0_89 = arith.constant 0 : index
      %189 = vector.load %arg6[%c0_88, %c0_89] : memref<8x32xf32, #tpu.memory_space<vmem>>, vector<8x32xf32>
      %190 = arith.addf %188, %189 : vector<8x32xf32>
      %c0_90 = arith.constant 0 : index
      %c0_91 = arith.constant 0 : index
      %191 = vector.load %arg22[%c0_90, %c0_91] : memref<8x32xf32, #tpu.memory_space<vmem>>, vector<8x32xf32>
      tpu.vector_store %arg22[%c0_90, %c0_91], %190 {strides = array<i32>} : memref<8x32xf32, #tpu.memory_space<vmem>>, vector<8x32xf32>,
      %192 = tpu.iota {dimensions = array<i32: 1>} : vector<8x8xi32>
      %193 = arith.index_cast %arg0 : i32 to index
      %194 = memref.load %arg2[%193] : memref<2xi32, #tpu.memory_space<smem>>
      %195 = vector.broadcast %194 : i32 to vector<8x8xi32>
      %196 = arith.cmpi slt, %192, %195 : vector<8x8xi32>
      %cst_92 = arith.constant 0.000000e+00 : f32
      %cst_93 = arith.constant -1.000000e+09 : f32
      %197 = vector.broadcast %cst_92 : f32 to vector<8x8xf32>
      %198 = vector.broadcast %cst_93 : f32 to vector<8x8xf32>
      %199 = arith.select %196, %197, %198 : vector<8x8xi1>, vector<8x8xf32>
      %c0_94 = arith.constant 0 : index
      %c0_95 = arith.constant 0 : index
      %200 = vector.load %arg23[%c0_94, %c0_95] : memref<8x8xf32, #tpu.memory_space<vmem>>, vector<8x8xf32>
      tpu.vector_store %arg23[%c0_94, %c0_95], %199 {strides = array<i32>} : memref<8x8xf32, #tpu.memory_space<vmem>>, vector<8x8xf32>,
    } else {
    }
    %c0 = arith.constant 0 : index
    %c0_1 = arith.constant 0 : index
    %3 = vector.load %arg22[%c0, %c0_1] : memref<8x32xf32, #tpu.memory_space<vmem>>, vector<8x32xf32>
    %c0_2 = arith.constant 0 : index
    %c0_3 = arith.constant 0 : index
    %4 = vector.load %arg23[%c0_2, %c0_3] : memref<8x8xf32, #tpu.memory_space<vmem>>, vector<8x8xf32>
    %c0_4 = arith.constant 0 : index
    %c0_5 = arith.constant 0 : index
    %c0_6 = arith.constant 0 : index
    %5 = vector.load %arg7[%c0_4, %c0_5, %c0_6] : memref<1x1x32xf32, #tpu.memory_space<vmem>>, vector<1x1x32xf32>
    %6 = vector.shape_cast %5 : vector<1x1x32xf32> to vector<1x32xf32>
    %c0_7 = arith.constant 0 : index
    %c0_8 = arith.constant 0 : index
    %c0_9 = arith.constant 0 : index
    %7 = vector.load %arg8[%c0_7, %c0_8, %c0_9] : memref<1x1x32xf32, #tpu.memory_space<vmem>>, vector<1x1x32xf32>
    %8 = vector.shape_cast %7 : vector<1x1x32xf32> to vector<1x32xf32>
    %cst = arith.constant dense<0.000000e+00> : vector<8xf32>
    %9 = vector.multi_reduction <add>, %3, %cst [1] : vector<8x32xf32> to vector<8xf32>
    %10 = vector.shape_cast %9 : vector<8xf32> to vector<8x1xf32>
    %cst_10 = arith.constant 3.200000e+01 : f32
    %11 = vector.broadcast %cst_10 : f32 to vector<8x1xf32>
    %12 = arith.divf %10, %11 : vector<8x1xf32>
    %13 = vector.broadcast %12 : vector<8x1xf32> to vector<8x32xf32>
    %14 = arith.subf %3, %13 : vector<8x32xf32>
    %15 = arith.mulf %14, %14 : vector<8x32xf32>
    %cst_11 = arith.constant dense<0.000000e+00> : vector<8xf32>
    %16 = vector.multi_reduction <add>, %15, %cst_11 [1] : vector<8x32xf32> to vector<8xf32>
    %17 = vector.shape_cast %16 : vector<8xf32> to vector<8x1xf32>
    %cst_12 = arith.constant 3.200000e+01 : f32
    %18 = vector.broadcast %cst_12 : f32 to vector<8x1xf32>
    %19 = arith.divf %17, %18 : vector<8x1xf32>
    %20 = vector.broadcast %12 : vector<8x1xf32> to vector<8x32xf32>
    %21 = arith.subf %3, %20 : vector<8x32xf32>
    %cst_13 = arith.constant 9.99999997E-7 : f32
    %22 = vector.broadcast %cst_13 : f32 to vector<8x1xf32>
    %23 = arith.addf %19, %22 : vector<8x1xf32>
    %24 = math.rsqrt %23 : vector<8x1xf32>
    %25 = vector.broadcast %24 : vector<8x1xf32> to vector<8x32xf32>
    %26 = arith.mulf %21, %25 : vector<8x32xf32>
    %27 = vector.broadcast %6 : vector<1x32xf32> to vector<8x32xf32>
    %28 = arith.mulf %26, %27 : vector<8x32xf32>
    %29 = vector.broadcast %8 : vector<1x32xf32> to vector<8x32xf32>
    %30 = arith.addf %28, %29 : vector<8x32xf32>
    %c0_14 = arith.constant 0 : index
    %c0_15 = arith.constant 0 : index
    %c0_16 = arith.constant 0 : index
    %31 = vector.load %arg9[%c0_14, %c0_15, %c0_16] : memref<1x32x96xbf16, #tpu.memory_space<vmem>>, vector<1x32x96xbf16>
    %32 = vector.shape_cast %31 : vector<1x32x96xbf16> to vector<32x96xbf16>
    %33 = arith.truncf %30 : vector<8x32xf32> to vector<8x32xbf16>
    %cst_17 = arith.constant dense<0.000000e+00> : vector<8x96xf32>
    %34 = tpu.matmul %33, %32, %cst_17 {dimension_numbers = #tpu.dot_dimension_numbers<[1], [0], [0], [1], [0, 0, 1, 1], [], []>} : vector<8x32xbf16>, vector<32x96xbf16>, vector<8x96xf32> -> vector<8x96xf32>
    %c0_18 = arith.constant 0 : index
    %c0_19 = arith.constant 0 : index
    %c0_20 = arith.constant 0 : index
    %35 = vector.load %arg10[%c0_18, %c0_19, %c0_20] : memref<1x1x96xf32, #tpu.memory_space<vmem>>, vector<1x1x96xf32>
    %36 = vector.shape_cast %35 : vector<1x1x96xf32> to vector<1x96xf32>
    %37 = vector.broadcast %36 : vector<1x96xf32> to vector<8x96xf32>
    %38 = arith.addf %34, %37 : vector<8x96xf32>
    %39 = vector.extract_strided_slice %38 {offsets = [0, 0], sizes = [8, 8], strides = [1, 1]} : vector<8x96xf32> to vector<8x8xf32>
    %40 = vector.extract_strided_slice %38 {offsets = [0, 32], sizes = [8, 8], strides = [1, 1]} : vector<8x96xf32> to vector<8x8xf32>
    %41 = vector.extract_strided_slice %38 {offsets = [0, 64], sizes = [8, 8], strides = [1, 1]} : vector<8x96xf32> to vector<8x8xf32>
    %cst_21 = arith.constant dense<0.000000e+00> : vector<8x8xf32>
    %42 = tpu.matmul %39, %40, %cst_21 {dimension_numbers = #tpu.dot_dimension_numbers<[1], [1], [0], [0], [0, 0, 1, 0], [], []>} : vector<8x8xf32>, vector<8x8xf32>, vector<8x8xf32> -> vector<8x8xf32>
    %cst_22 = arith.constant 0.353553385 : f32
    %43 = vector.broadcast %cst_22 : f32 to vector<8x8xf32>
    %44 = arith.mulf %42, %43 : vector<8x8xf32>
    %45 = arith.addf %44, %4 : vector<8x8xf32>
    %cst_23 = arith.constant dense<0xFF800000> : vector<8xf32>
    %46 = vector.multi_reduction <maximumf>, %45, %cst_23 [1] : vector<8x8xf32> to vector<8xf32>
    %47 = vector.shape_cast %46 : vector<8xf32> to vector<8x1xf32>
    %48 = vector.broadcast %47 : vector<8x1xf32> to vector<8x8xf32>
    %49 = arith.subf %45, %48 : vector<8x8xf32>
    %50 = math.exp %49 : vector<8x8xf32>
    %cst_24 = arith.constant dense<0.000000e+00> : vector<8xf32>
    %51 = vector.multi_reduction <add>, %50, %cst_24 [1] : vector<8x8xf32> to vector<8xf32>
    %52 = vector.shape_cast %51 : vector<8xf32> to vector<8x1xf32>
    %53 = tpu.reciprocal %52 {approx = true} : vector<8x1xf32> -> vector<8x1xf32>
    %54 = vector.broadcast %53 : vector<8x1xf32> to vector<8x8xf32>
    %55 = arith.mulf %50, %54 : vector<8x8xf32>
    %cst_25 = arith.constant dense<0.000000e+00> : vector<8x8xf32>
    %56 = tpu.matmul %55, %41, %cst_25 {dimension_numbers = #tpu.dot_dimension_numbers<[1], [0], [0], [1], [0, 0, 1, 1], [], []>} : vector<8x8xf32>, vector<8x8xf32>, vector<8x8xf32> -> vector<8x8xf32>
    %57 = vector.extract_strided_slice %38 {offsets = [0, 8], sizes = [8, 8], strides = [1, 1]} : vector<8x96xf32> to vector<8x8xf32>
    %58 = vector.extract_strided_slice %38 {offsets = [0, 40], sizes = [8, 8], strides = [1, 1]} : vector<8x96xf32> to vector<8x8xf32>
    %59 = vector.extract_strided_slice %38 {offsets = [0, 72], sizes = [8, 8], strides = [1, 1]} : vector<8x96xf32> to vector<8x8xf32>
    %cst_26 = arith.constant dense<0.000000e+00> : vector<8x8xf32>
    %60 = tpu.matmul %57, %58, %cst_26 {dimension_numbers = #tpu.dot_dimension_numbers<[1], [1], [0], [0], [0, 0, 1, 0], [], []>} : vector<8x8xf32>, vector<8x8xf32>, vector<8x8xf32> -> vector<8x8xf32>
    %cst_27 = arith.constant 0.353553385 : f32
    %61 = vector.broadcast %cst_27 : f32 to vector<8x8xf32>
    %62 = arith.mulf %60, %61 : vector<8x8xf32>
    %63 = arith.addf %62, %4 : vector<8x8xf32>
    %cst_28 = arith.constant dense<0xFF800000> : vector<8xf32>
    %64 = vector.multi_reduction <maximumf>, %63, %cst_28 [1] : vector<8x8xf32> to vector<8xf32>
    %65 = vector.shape_cast %64 : vector<8xf32> to vector<8x1xf32>
    %66 = vector.broadcast %65 : vector<8x1xf32> to vector<8x8xf32>
    %67 = arith.subf %63, %66 : vector<8x8xf32>
    %68 = math.exp %67 : vector<8x8xf32>
    %cst_29 = arith.constant dense<0.000000e+00> : vector<8xf32>
    %69 = vector.multi_reduction <add>, %68, %cst_29 [1] : vector<8x8xf32> to vector<8xf32>
    %70 = vector.shape_cast %69 : vector<8xf32> to vector<8x1xf32>
    %71 = tpu.reciprocal %70 {approx = true} : vector<8x1xf32> -> vector<8x1xf32>
    %72 = vector.broadcast %71 : vector<8x1xf32> to vector<8x8xf32>
    %73 = arith.mulf %68, %72 : vector<8x8xf32>
    %cst_30 = arith.constant dense<0.000000e+00> : vector<8x8xf32>
    %74 = tpu.matmul %73, %59, %cst_30 {dimension_numbers = #tpu.dot_dimension_numbers<[1], [0], [0], [1], [0, 0, 1, 1], [], []>} : vector<8x8xf32>, vector<8x8xf32>, vector<8x8xf32> -> vector<8x8xf32>
    %75 = vector.extract_strided_slice %38 {offsets = [0, 16], sizes = [8, 8], strides = [1, 1]} : vector<8x96xf32> to vector<8x8xf32>
    %76 = vector.extract_strided_slice %38 {offsets = [0, 48], sizes = [8, 8], strides = [1, 1]} : vector<8x96xf32> to vector<8x8xf32>
    %77 = vector.extract_strided_slice %38 {offsets = [0, 80], sizes = [8, 8], strides = [1, 1]} : vector<8x96xf32> to vector<8x8xf32>
    %cst_31 = arith.constant dense<0.000000e+00> : vector<8x8xf32>
    %78 = tpu.matmul %75, %76, %cst_31 {dimension_numbers = #tpu.dot_dimension_numbers<[1], [1], [0], [0], [0, 0, 1, 0], [], []>} : vector<8x8xf32>, vector<8x8xf32>, vector<8x8xf32> -> vector<8x8xf32>
    %cst_32 = arith.constant 0.353553385 : f32
    %79 = vector.broadcast %cst_32 : f32 to vector<8x8xf32>
    %80 = arith.mulf %78, %79 : vector<8x8xf32>
    %81 = arith.addf %80, %4 : vector<8x8xf32>
    %cst_33 = arith.constant dense<0xFF800000> : vector<8xf32>
    %82 = vector.multi_reduction <maximumf>, %81, %cst_33 [1] : vector<8x8xf32> to vector<8xf32>
    %83 = vector.shape_cast %82 : vector<8xf32> to vector<8x1xf32>
    %84 = vector.broadcast %83 : vector<8x1xf32> to vector<8x8xf32>
    %85 = arith.subf %81, %84 : vector<8x8xf32>
    %86 = math.exp %85 : vector<8x8xf32>
    %cst_34 = arith.constant dense<0.000000e+00> : vector<8xf32>
    %87 = vector.multi_reduction <add>, %86, %cst_34 [1] : vector<8x8xf32> to vector<8xf32>
    %88 = vector.shape_cast %87 : vector<8xf32> to vector<8x1xf32>
    %89 = tpu.reciprocal %88 {approx = true} : vector<8x1xf32> -> vector<8x1xf32>
    %90 = vector.broadcast %89 : vector<8x1xf32> to vector<8x8xf32>
    %91 = arith.mulf %86, %90 : vector<8x8xf32>
    %cst_35 = arith.constant dense<0.000000e+00> : vector<8x8xf32>
    %92 = tpu.matmul %91, %77, %cst_35 {dimension_numbers = #tpu.dot_dimension_numbers<[1], [0], [0], [1], [0, 0, 1, 1], [], []>} : vector<8x8xf32>, vector<8x8xf32>, vector<8x8xf32> -> vector<8x8xf32>
    %93 = vector.extract_strided_slice %38 {offsets = [0, 24], sizes = [8, 8], strides = [1, 1]} : vector<8x96xf32> to vector<8x8xf32>
    %94 = vector.extract_strided_slice %38 {offsets = [0, 56], sizes = [8, 8], strides = [1, 1]} : vector<8x96xf32> to vector<8x8xf32>
    %95 = vector.extract_strided_slice %38 {offsets = [0, 88], sizes = [8, 8], strides = [1, 1]} : vector<8x96xf32> to vector<8x8xf32>
    %cst_36 = arith.constant dense<0.000000e+00> : vector<8x8xf32>
    %96 = tpu.matmul %93, %94, %cst_36 {dimension_numbers = #tpu.dot_dimension_numbers<[1], [1], [0], [0], [0, 0, 1, 0], [], []>} : vector<8x8xf32>, vector<8x8xf32>, vector<8x8xf32> -> vector<8x8xf32>
    %cst_37 = arith.constant 0.353553385 : f32
    %97 = vector.broadcast %cst_37 : f32 to vector<8x8xf32>
    %98 = arith.mulf %96, %97 : vector<8x8xf32>
    %99 = arith.addf %98, %4 : vector<8x8xf32>
    %cst_38 = arith.constant dense<0xFF800000> : vector<8xf32>
    %100 = vector.multi_reduction <maximumf>, %99, %cst_38 [1] : vector<8x8xf32> to vector<8xf32>
    %101 = vector.shape_cast %100 : vector<8xf32> to vector<8x1xf32>
    %102 = vector.broadcast %101 : vector<8x1xf32> to vector<8x8xf32>
    %103 = arith.subf %99, %102 : vector<8x8xf32>
    %104 = math.exp %103 : vector<8x8xf32>
    %cst_39 = arith.constant dense<0.000000e+00> : vector<8xf32>
    %105 = vector.multi_reduction <add>, %104, %cst_39 [1] : vector<8x8xf32> to vector<8xf32>
    %106 = vector.shape_cast %105 : vector<8xf32> to vector<8x1xf32>
    %107 = tpu.reciprocal %106 {approx = true} : vector<8x1xf32> -> vector<8x1xf32>
    %108 = vector.broadcast %107 : vector<8x1xf32> to vector<8x8xf32>
    %109 = arith.mulf %104, %108 : vector<8x8xf32>
    %cst_40 = arith.constant dense<0.000000e+00> : vector<8x8xf32>
    %110 = tpu.matmul %109, %95, %cst_40 {dimension_numbers = #tpu.dot_dimension_numbers<[1], [0], [0], [1], [0, 0, 1, 1], [], []>} : vector<8x8xf32>, vector<8x8xf32>, vector<8x8xf32> -> vector<8x8xf32>
    %111 = tpu.concatenate %56, %74, %92, %110 in 1 : vector<8x8xf32>, vector<8x8xf32>, vector<8x8xf32>, vector<8x8xf32> -> vector<8x32xf32>
    %c0_41 = arith.constant 0 : index
    %c0_42 = arith.constant 0 : index
    %c0_43 = arith.constant 0 : index
    %112 = vector.load %arg11[%c0_41, %c0_42, %c0_43] : memref<1x32x32xbf16, #tpu.memory_space<vmem>>, vector<1x32x32xbf16>
    %113 = vector.shape_cast %112 : vector<1x32x32xbf16> to vector<32x32xbf16>
    %114 = arith.truncf %111 : vector<8x32xf32> to vector<8x32xbf16>
    %cst_44 = arith.constant dense<0.000000e+00> : vector<8x32xf32>
    %115 = tpu.matmul %114, %113, %cst_44 {dimension_numbers = #tpu.dot_dimension_numbers<[1], [0], [0], [1], [0, 0, 1, 1], [], []>} : vector<8x32xbf16>, vector<32x32xbf16>, vector<8x32xf32> -> vector<8x32xf32>
    %116 = arith.addf %3, %115 : vector<8x32xf32>
    %c0_45 = arith.constant 0 : index
    %c0_46 = arith.constant 0 : index
    %c0_47 = arith.constant 0 : index
    %117 = vector.load %arg12[%c0_45, %c0_46, %c0_47] : memref<1x1x32xf32, #tpu.memory_space<vmem>>, vector<1x1x32xf32>
    %118 = vector.shape_cast %117 : vector<1x1x32xf32> to vector<1x32xf32>
    %119 = vector.broadcast %118 : vector<1x32xf32> to vector<8x32xf32>
    %120 = arith.addf %116, %119 : vector<8x32xf32>
    %c0_48 = arith.constant 0 : index
    %c0_49 = arith.constant 0 : index
    %c0_50 = arith.constant 0 : index
    %121 = vector.load %arg13[%c0_48, %c0_49, %c0_50] : memref<1x1x32xf32, #tpu.memory_space<vmem>>, vector<1x1x32xf32>
    %122 = vector.shape_cast %121 : vector<1x1x32xf32> to vector<1x32xf32>
    %c0_51 = arith.constant 0 : index
    %c0_52 = arith.constant 0 : index
    %c0_53 = arith.constant 0 : index
    %123 = vector.load %arg14[%c0_51, %c0_52, %c0_53] : memref<1x1x32xf32, #tpu.memory_space<vmem>>, vector<1x1x32xf32>
    %124 = vector.shape_cast %123 : vector<1x1x32xf32> to vector<1x32xf32>
    %cst_54 = arith.constant dense<0.000000e+00> : vector<8xf32>
    %125 = vector.multi_reduction <add>, %120, %cst_54 [1] : vector<8x32xf32> to vector<8xf32>
    %126 = vector.shape_cast %125 : vector<8xf32> to vector<8x1xf32>
    %cst_55 = arith.constant 3.200000e+01 : f32
    %127 = vector.broadcast %cst_55 : f32 to vector<8x1xf32>
    %128 = arith.divf %126, %127 : vector<8x1xf32>
    %129 = vector.broadcast %128 : vector<8x1xf32> to vector<8x32xf32>
    %130 = arith.subf %120, %129 : vector<8x32xf32>
    %131 = arith.mulf %130, %130 : vector<8x32xf32>
    %cst_56 = arith.constant dense<0.000000e+00> : vector<8xf32>
    %132 = vector.multi_reduction <add>, %131, %cst_56 [1] : vector<8x32xf32> to vector<8xf32>
    %133 = vector.shape_cast %132 : vector<8xf32> to vector<8x1xf32>
    %cst_57 = arith.constant 3.200000e+01 : f32
    %134 = vector.broadcast %cst_57 : f32 to vector<8x1xf32>
    %135 = arith.divf %133, %134 : vector<8x1xf32>
    %136 = vector.broadcast %128 : vector<8x1xf32> to vector<8x32xf32>
    %137 = arith.subf %120, %136 : vector<8x32xf32>
    %cst_58 = arith.constant 9.99999997E-7 : f32
    %138 = vector.broadcast %cst_58 : f32 to vector<8x1xf32>
    %139 = arith.addf %135, %138 : vector<8x1xf32>
    %140 = math.rsqrt %139 : vector<8x1xf32>
    %141 = vector.broadcast %140 : vector<8x1xf32> to vector<8x32xf32>
    %142 = arith.mulf %137, %141 : vector<8x32xf32>
    %143 = vector.broadcast %122 : vector<1x32xf32> to vector<8x32xf32>
    %144 = arith.mulf %142, %143 : vector<8x32xf32>
    %145 = vector.broadcast %124 : vector<1x32xf32> to vector<8x32xf32>
    %146 = arith.addf %144, %145 : vector<8x32xf32>
    %c0_59 = arith.constant 0 : index
    %c0_60 = arith.constant 0 : index
    %c0_61 = arith.constant 0 : index
    %147 = vector.load %arg15[%c0_59, %c0_60, %c0_61] : memref<1x32x128xbf16, #tpu.memory_space<vmem>>, vector<1x32x128xbf16>
    %148 = vector.shape_cast %147 : vector<1x32x128xbf16> to vector<32x128xbf16>
    %149 = arith.truncf %146 : vector<8x32xf32> to vector<8x32xbf16>
    %cst_62 = arith.constant dense<0.000000e+00> : vector<8x128xf32>
    %150 = tpu.matmul %149, %148, %cst_62 {dimension_numbers = #tpu.dot_dimension_numbers<[1], [0], [0], [1], [0, 0, 1, 1], [], []>} : vector<8x32xbf16>, vector<32x128xbf16>, vector<8x128xf32> -> vector<8x128xf32>
    %c0_63 = arith.constant 0 : index
    %c0_64 = arith.constant 0 : index
    %c0_65 = arith.constant 0 : index
    %151 = vector.load %arg16[%c0_63, %c0_64, %c0_65] : memref<1x1x128xf32, #tpu.memory_space<vmem>>, vector<1x1x128xf32>
    %152 = vector.shape_cast %151 : vector<1x1x128xf32> to vector<1x128xf32>
    %153 = vector.broadcast %152 : vector<1x128xf32> to vector<8x128xf32>
    %154 = arith.addf %150, %153 : vector<8x128xf32>
    %cst_66 = arith.constant 5.000000e-01 : f32
    %155 = vector.broadcast %cst_66 : f32 to vector<8x128xf32>
    %156 = arith.mulf %155, %154 : vector<8x128xf32>
    %cst_67 = arith.constant 4.471500e-02 : f32
    %157 = vector.broadcast %cst_67 : f32 to vector<8x128xf32>
    %158 = arith.mulf %157, %154 : vector<8x128xf32>
    %159 = arith.mulf %158, %154 : vector<8x128xf32>
    %160 = arith.mulf %159, %154 : vector<8x128xf32>
    %161 = arith.addf %154, %160 : vector<8x128xf32>
    %cst_68 = arith.constant 0.797884583 : f32
    %162 = vector.broadcast %cst_68 : f32 to vector<8x128xf32>
    %163 = arith.mulf %162, %161 : vector<8x128xf32>
    %164 = math.tanh %163 : vector<8x128xf32>
    %cst_69 = arith.constant 1.000000e+00 : f32
    %165 = vector.broadcast %cst_69 : f32 to vector<8x128xf32>
    %166 = arith.addf %165, %164 : vector<8x128xf32>
    %167 = arith.mulf %156, %166 : vector<8x128xf32>
    %c0_70 = arith.constant 0 : index
    %c0_71 = arith.constant 0 : index
    %c0_72 = arith.constant 0 : index
    %168 = vector.load %arg17[%c0_70, %c0_71, %c0_72] : memref<1x128x32xbf16, #tpu.memory_space<vmem>>, vector<1x128x32xbf16>
    %169 = vector.shape_cast %168 : vector<1x128x32xbf16> to vector<128x32xbf16>
    %170 = arith.truncf %167 : vector<8x128xf32> to vector<8x128xbf16>
    %cst_73 = arith.constant dense<0.000000e+00> : vector<8x32xf32>
    %171 = tpu.matmul %170, %169, %cst_73 {dimension_numbers = #tpu.dot_dimension_numbers<[1], [0], [0], [1], [0, 0, 1, 1], [], []>} : vector<8x128xbf16>, vector<128x32xbf16>, vector<8x32xf32> -> vector<8x32xf32>
    %172 = arith.addf %120, %171 : vector<8x32xf32>
    %c0_74 = arith.constant 0 : index
    %c0_75 = arith.constant 0 : index
    %c0_76 = arith.constant 0 : index
    %173 = vector.load %arg18[%c0_74, %c0_75, %c0_76] : memref<1x1x32xf32, #tpu.memory_space<vmem>>, vector<1x1x32xf32>
    %174 = vector.shape_cast %173 : vector<1x1x32xf32> to vector<1x32xf32>
    %175 = vector.broadcast %174 : vector<1x32xf32> to vector<8x32xf32>
    %176 = arith.addf %172, %175 : vector<8x32xf32>
    %c0_77 = arith.constant 0 : index
    %c0_78 = arith.constant 0 : index
    %177 = vector.load %arg22[%c0_77, %c0_78] : memref<8x32xf32, #tpu.memory_space<vmem>>, vector<8x32xf32>
    tpu.vector_store %arg22[%c0_77, %c0_78], %176 {strides = array<i32>} : memref<8x32xf32, #tpu.memory_space<vmem>>, vector<8x32xf32>,
    %c1_i32 = arith.constant 1 : i32
    %178 = arith.cmpi sge, %arg1, %c1_i32 : i32
    %179 = arith.extui %178 : i1 to i32
    %c0_i32_79 = arith.constant 0 : i32
    %180 = arith.cmpi ne, %179, %c0_i32_79 : i32
    scf.if %180 {
      %c0_80 = arith.constant 0 : index
      %c0_81 = arith.constant 0 : index
      %181 = vector.load %arg19[%c0_80, %c0_81] : memref<1x32xf32, #tpu.memory_space<vmem>>, vector<1x32xf32>
      %c0_82 = arith.constant 0 : index
      %c0_83 = arith.constant 0 : index
      %182 = vector.load %arg20[%c0_82, %c0_83] : memref<1x32xf32, #tpu.memory_space<vmem>>, vector<1x32xf32>
      %cst_84 = arith.constant dense<0.000000e+00> : vector<8xf32>
      %183 = vector.multi_reduction <add>, %176, %cst_84 [1] : vector<8x32xf32> to vector<8xf32>
      %184 = vector.shape_cast %183 : vector<8xf32> to vector<8x1xf32>
      %cst_85 = arith.constant 3.200000e+01 : f32
      %185 = vector.broadcast %cst_85 : f32 to vector<8x1xf32>
      %186 = arith.divf %184, %185 : vector<8x1xf32>
      %187 = vector.broadcast %186 : vector<8x1xf32> to vector<8x32xf32>
      %188 = arith.subf %176, %187 : vector<8x32xf32>
      %189 = arith.mulf %188, %188 : vector<8x32xf32>
      %cst_86 = arith.constant dense<0.000000e+00> : vector<8xf32>
      %190 = vector.multi_reduction <add>, %189, %cst_86 [1] : vector<8x32xf32> to vector<8xf32>
      %191 = vector.shape_cast %190 : vector<8xf32> to vector<8x1xf32>
      %cst_87 = arith.constant 3.200000e+01 : f32
      %192 = vector.broadcast %cst_87 : f32 to vector<8x1xf32>
      %193 = arith.divf %191, %192 : vector<8x1xf32>
      %194 = vector.broadcast %186 : vector<8x1xf32> to vector<8x32xf32>
      %195 = arith.subf %176, %194 : vector<8x32xf32>
      %cst_88 = arith.constant 9.99999997E-7 : f32
      %196 = vector.broadcast %cst_88 : f32 to vector<8x1xf32>
      %197 = arith.addf %193, %196 : vector<8x1xf32>
      %198 = math.rsqrt %197 : vector<8x1xf32>
      %199 = vector.broadcast %198 : vector<8x1xf32> to vector<8x32xf32>
      %200 = arith.mulf %195, %199 : vector<8x32xf32>
      %201 = vector.broadcast %181 : vector<1x32xf32> to vector<8x32xf32>
      %202 = arith.mulf %200, %201 : vector<8x32xf32>
      %203 = vector.broadcast %182 : vector<1x32xf32> to vector<8x32xf32>
      %204 = arith.addf %202, %203 : vector<8x32xf32>
      %c0_89 = arith.constant 0 : index
      %c0_90 = arith.constant 0 : index
      %c0_91 = arith.constant 0 : index
      %c0_92 = arith.constant 0 : index
      %205 = vector.load %arg21[%c0_89, %c0_90, %c0_91, %c0_92] : memref<1x1x8x32xf32, #tpu.memory_space<vmem>>, vector<1x1x8x32xf32>
      %206 = vector.shape_cast %205 : vector<1x1x8x32xf32> to vector<8x32xf32>
      %207 = vector.shape_cast %204 : vector<8x32xf32> to vector<1x1x8x32xf32>
      tpu.vector_store %arg21[%c0_89, %c0_90, %c0_91, %c0_92], %207 {strides = array<i32>} : memref<1x1x8x32xf32, #tpu.memory_space<vmem>>, vector<1x1x8x32xf32>,
    } else {
    }
    return
  }
  func.func @transform_0(%arg0: i32, %arg1: i32, %arg2: memref<2xi32, #tpu.memory_space<smem>>) -> (i32, i32, i32) {
    %c0_i32 = arith.constant 0 : i32
    %c0_i32_0 = arith.constant 0 : i32
    %c0_i32_1 = arith.constant 0 : i32
    return %arg0, %c0_i32, %c0_i32_0 : i32, i32, i32
  }
  func.func @transform_1(%arg0: i32, %arg1: i32, %arg2: memref<2xi32, #tpu.memory_space<smem>>) -> (i32, i32) {
    %c0_i32 = arith.constant 0 : i32
    %c0_i32_0 = arith.constant 0 : i32
    %c0_i32_1 = arith.constant 0 : i32
    return %c0_i32, %c0_i32_0 : i32, i32
  }
  func.func @transform_2(%arg0: i32, %arg1: i32, %arg2: memref<2xi32, #tpu.memory_space<smem>>) -> (i32, i32) {
    %c0_i32 = arith.constant 0 : i32
    %c0_i32_0 = arith.constant 0 : i32
    %c0_i32_1 = arith.constant 0 : i32
    return %c0_i32, %c0_i32_0 : i32, i32
  }
  func.func @transform_3(%arg0: i32, %arg1: i32, %arg2: memref<2xi32, #tpu.memory_space<smem>>) -> (i32, i32) {
    %c0_i32 = arith.constant 0 : i32
    %c0_i32_0 = arith.constant 0 : i32
    %c0_i32_1 = arith.constant 0 : i32
    return %c0_i32, %c0_i32_0 : i32, i32
  }
  func.func @transform_4(%arg0: i32, %arg1: i32, %arg2: memref<2xi32, #tpu.memory_space<smem>>) -> (i32, i32, i32) {
    %c0_i32 = arith.constant 0 : i32
    %c0_i32_0 = arith.constant 0 : i32
    %c0_i32_1 = arith.constant 0 : i32
    return %arg1, %c0_i32, %c0_i32_0 : i32, i32, i32
  }
  func.func @transform_5(%arg0: i32, %arg1: i32, %arg2: memref<2xi32, #tpu.memory_space<smem>>) -> (i32, i32, i32) {
    %c0_i32 = arith.constant 0 : i32
    %c0_i32_0 = arith.constant 0 : i32
    %c0_i32_1 = arith.constant 0 : i32
    return %arg1, %c0_i32, %c0_i32_0 : i32, i32, i32
  }
  func.func @transform_6(%arg0: i32, %arg1: i32, %arg2: memref<2xi32, #tpu.memory_space<smem>>) -> (i32, i32, i32) {
    %c0_i32 = arith.constant 0 : i32
    %c0_i32_0 = arith.constant 0 : i32
    %c0_i32_1 = arith.constant 0 : i32
    return %arg1, %c0_i32, %c0_i32_0 : i32, i32, i32
  }
  func.func @transform_7(%arg0: i32, %arg1: i32, %arg2: memref<2xi32, #tpu.memory_space<smem>>) -> (i32, i32, i32) {
    %c0_i32 = arith.constant 0 : i32
    %c0_i32_0 = arith.constant 0 : i32
    %c0_i32_1 = arith.constant 0 : i32
    return %arg1, %c0_i32, %c0_i32_0 : i32, i32, i32
  }
  func.func @transform_8(%arg0: i32, %arg1: i32, %arg2: memref<2xi32, #tpu.memory_space<smem>>) -> (i32, i32, i32) {
    %c0_i32 = arith.constant 0 : i32
    %c0_i32_0 = arith.constant 0 : i32
    %c0_i32_1 = arith.constant 0 : i32
    return %arg1, %c0_i32, %c0_i32_0 : i32, i32, i32
  }
  func.func @transform_9(%arg0: i32, %arg1: i32, %arg2: memref<2xi32, #tpu.memory_space<smem>>) -> (i32, i32, i32) {
    %c0_i32 = arith.constant 0 : i32
    %c0_i32_0 = arith.constant 0 : i32
    %c0_i32_1 = arith.constant 0 : i32
    return %arg1, %c0_i32, %c0_i32_0 : i32, i32, i32
  }
  func.func @transform_10(%arg0: i32, %arg1: i32, %arg2: memref<2xi32, #tpu.memory_space<smem>>) -> (i32, i32, i32) {
    %c0_i32 = arith.constant 0 : i32
    %c0_i32_0 = arith.constant 0 : i32
    %c0_i32_1 = arith.constant 0 : i32
    return %arg1, %c0_i32, %c0_i32_0 : i32, i32, i32
  }
  func.func @transform_11(%arg0: i32, %arg1: i32, %arg2: memref<2xi32, #tpu.memory_space<smem>>) -> (i32, i32, i32) {
    %c0_i32 = arith.constant 0 : i32
    %c0_i32_0 = arith.constant 0 : i32
    %c0_i32_1 = arith.constant 0 : i32
    return %arg1, %c0_i32, %c0_i32_0 : i32, i32, i32
  }
  func.func @transform_12(%arg0: i32, %arg1: i32, %arg2: memref<2xi32, #tpu.memory_space<smem>>) -> (i32, i32, i32) {
    %c0_i32 = arith.constant 0 : i32
    %c0_i32_0 = arith.constant 0 : i32
    %c0_i32_1 = arith.constant 0 : i32
    return %arg1, %c0_i32, %c0_i32_0 : i32, i32, i32
  }
  func.func @transform_13(%arg0: i32, %arg1: i32, %arg2: memref<2xi32, #tpu.memory_space<smem>>) -> (i32, i32, i32) {
    %c0_i32 = arith.constant 0 : i32
    %c0_i32_0 = arith.constant 0 : i32
    %c0_i32_1 = arith.constant 0 : i32
    return %arg1, %c0_i32, %c0_i32_0 : i32, i32, i32
  }
  func.func @transform_14(%arg0: i32, %arg1: i32, %arg2: memref<2xi32, #tpu.memory_space<smem>>) -> (i32, i32, i32) {
    %c0_i32 = arith.constant 0 : i32
    %c0_i32_0 = arith.constant 0 : i32
    %c0_i32_1 = arith.constant 0 : i32
    return %arg1, %c0_i32, %c0_i32_0 : i32, i32, i32
  }
  func.func @transform_15(%arg0: i32, %arg1: i32, %arg2: memref<2xi32, #tpu.memory_space<smem>>) -> (i32, i32, i32) {
    %c0_i32 = arith.constant 0 : i32
    %c0_i32_0 = arith.constant 0 : i32
    %c0_i32_1 = arith.constant 0 : i32
    return %arg1, %c0_i32, %c0_i32_0 : i32, i32, i32
  }
  func.func @transform_16(%arg0: i32, %arg1: i32, %arg2: memref<2xi32, #tpu.memory_space<smem>>) -> (i32, i32) {
    %c0_i32 = arith.constant 0 : i32
    %c0_i32_0 = arith.constant 0 : i32
    %c0_i32_1 = arith.constant 0 : i32
    return %c0_i32, %c0_i32_0 : i32, i32
  }
  func.func @transform_17(%arg0: i32, %arg1: i32, %arg2: memref<2xi32, #tpu.memory_space<smem>>) -> (i32, i32) {
    %c0_i32 = arith.constant 0 : i32
    %c0_i32_0 = arith.constant 0 : i32
    %c0_i32_1 = arith.constant 0 : i32
    return %c0_i32, %c0_i32_0 : i32, i32
  }
  func.func @transform_18(%arg0: i32, %arg1: i32, %arg2: memref<2xi32, #tpu.memory_space<smem>>) -> (i32, i32, i32, i32) {
    %c1_i32 = arith.constant 1 : i32
    %0 = arith.subi %arg1, %c1_i32 : i32
    %c0_i32 = arith.constant 0 : i32
    %1 = arith.maxsi %0, %c0_i32 : i32
    %c0_i32_0 = arith.constant 0 : i32
    %c0_i32_1 = arith.constant 0 : i32
    %c0_i32_2 = arith.constant 0 : i32
    return %arg0, %1, %c0_i32_0, %c0_i32_1 : i32, i32, i32, i32
  }
}

</mosaic_0001>

<bundles_post_ra>
// kernel: tpu_custom_call.1
= control target key start
LH: loop header
LB: loop body
LE: loop exit
PB: predicated region body
PF: predicated region fallthrough
CT: control target
= control target key end

     0   :  { %s3332_s0 = inlined_call_operand.vmem [shape: s32[2], index: 0, kind: input, shape index: {}]   ;;  %s3333_s1 = inlined_call_operand.vmem [shape: f32[2,8,256], index: 1, kind: input, shape index: {}]   ;;  %s3334_s2 = inlined_call_operand.vmem [shape: bf16[256,32], index: 2, kind: input, shape index: {}]   ;;  %s3335_s3 = inlined_call_operand.vmem [shape: f32[1,32], index: 3, kind: input, shape index: {}]   ;;  %s3336_s4 = inlined_call_operand.vmem [shape: f32[8,32], index: 4, kind: input, shape index: {}]   ;;  %s3337_s5 = inlined_call_operand.vmem [shape: f32[2,1,32], index: 5, kind: input, shape index: {}]   ;;  %s3338_s6 = inlined_call_operand.vmem [shape: f32[2,1,32], index: 6, kind: input, shape index: {}]   ;;  %s3339_s7 = inlined_call_operand.vmem [shape: bf16[2,32,96], index: 7, kind: input, shape index: {}]   ;;  %s3340_s8 = inlined_call_operand.vmem [shape: f32[2,1,96], index: 8, kind: input, shape index: {}]   ;;  %s3341_s9 = inlined_call_operand.vmem [shape: bf16[2,32,32], index: 9, kind: input, shape index: {}]   ;;  %s3342_s10 = inlined_call_operand.vmem [shape: f32[2,1,32], index: 10, kind: input, shape index: {}]   ;;  %s3343_s11 = inlined_call_operand.vmem [shape: f32[2,1,32], index: 11, kind: input, shape index: {}]   ;;  %s3344_s12 = inlined_call_operand.vmem [shape: f32[2,1,32], index: 12, kind: input, shape index: {}]   ;;  %s3345_s13 = inlined_call_operand.vmem [shape: bf16[2,32,128], index: 13, kind: input, shape index: {}]   ;;  %s3346_s14 = inlined_call_operand.vmem [shape: f32[2,1,128], index: 14, kind: input, shape index: {}]   ;;  %s3347_s15 = inlined_call_operand.vmem [shape: bf16[2,128,32], index: 15, kind: input, shape index: {}]   ;;  %s3348_s16 = inlined_call_operand.vmem [shape: f32[2,1,32], index: 16, kind: input, shape index: {}]   ;;  %s3349_s17 = inlined_call_operand.vmem [shape: f32[1,32], index: 17, kind: input, shape index: {}]   ;;  %s3350_s18 = inlined_call_operand.vmem [shape: f32[1,32], index: 18, kind: input, shape index: {}]   ;;  %s3351_s19 = inlined_call_operand.hbm [shape: f32[2,1,8,32], index: 19, kind: output, shape index: {}]  }
   0x1   :  { %3368 = sst [smem:[#allocation23_spill]] %s3332_s0 }
   0x2   :  { %3369 = sst [smem:[#allocation24_spill]] %s3333_s1 }
   0x3   :  { %3370 = sst [smem:[#allocation25_spill]] %s3334_s2 }
   0x4   :  { %3371 = sst [smem:[#allocation26_spill]] %s3335_s3 }
   0x5   :  { %3372 = sst [smem:[#allocation27_spill]] %s3336_s4 }
   0x6   :  { %3373 = sst [smem:[#allocation28_spill]] %s3338_s6 }
   0x7   :  { %3374 = sst [smem:[#allocation29_spill]] %s3339_s7 }
   0x8   :  { %3375 = sst [smem:[#allocation30_spill]] %s3341_s9 }
   0x9   :  { %3376 = sst [smem:[#allocation31_spill]] %s3349_s17 }
   0xa   :  { %3377 = sst [smem:[#allocation32_spill]] %s3350_s18 }
   0xb   :  { %3378 = sst [smem:[#allocation33_spill]] %s3351_s19 }
   0xc   :  { %s3379_s20 = sld [smem:[#allocation23_spill]] }
  0x12   :  { %s24_s4 = sshll.u32 %s3379_s20, 4  ;;  %s25_s4 = int_to_ptr.vmem [resolvable:$true] %s24_s4 }
  0x13   :  { %s2678_s21 = scalar_lea.vmem %s25_s4, 16  ;;  %p2683_p1 = scmp.lt.s32.totalorder %s25_s4, %s25_s4 }
  0x14   :  { %p2679_p0 = scmp.ne.s32.totalorder %s25_s4, %s2678_s21  ;;  %p2684_p2 = scmp.lt.s32.totalorder %s2678_s21, %s2678_s21 }
  0x16   :  { %p2685_p3 = por %p2684_p2, %p2683_p1 }
  0x18   :  { %p2686_p4 = pnand %p2685_p3, %p2679_p0 }
  0x1a   :  { %2689 = shalt.err (!%p2686_p4)  }
  0x1b   :  { %s2786_s1 = smov [#allocation5]  }
  0x1c   :  { %27 = dma.vmem_to_smem %s25_s4, 16, %s2786_s1, [#allocation4] }
  0x1d   :  { %2748 = dma.done.wait [#allocation4], 16 }
  0x1e   :  { %2749 = vsyncadd [#allocation4], 4294967280 }
  0x1f   :  { %29 = sfence }
  0x20   :  { %30 = vsyncpa [#allocation7], 0 }
  0x21   :  { %32 = vsyncpa [#allocation7 + $0x1], 0  ;;  %s2908_s22 = smov 0   ;;  %s2910_s2 = smov 0  }
  0x22   :  { %s2912_s23 = smov 0   ;;  %s2914_s24 = smov 0  }
  0x23   :  { %s2916_s25 = smov 0   ;;  %s2918_s3 = smov 0  }
  0x24   :  { %s2920_s26 = smov 0   ;;  %s2922_s4 = smov 0  }
  0x25 LB: > { %3380 = sst [smem:[#allocation10_spill]] %s2756_s22  ;;  %s2309_s27 = sadd.s32 4294967295, %s2784_s4   ;;  %s2784_s4 = sphi %s2922_s4, %s38_s4   ;;  %s2780_s26 = sphi %s2920_s26, %s3431_s26   ;;  %s2776_s3 = sphi %s2918_s3, %s3430_s3   ;;  %s2772_s25 = sphi %s2916_s25, %s3429_s25   ;;  %s2768_s24 = sphi %s2914_s24, %s3428_s24   ;;  %s2764_s23 = sphi %s2912_s23, %s3427_s23   ;;  %s2760_s2 = sphi %s2910_s2, %s3426_s2   ;;  %s2756_s22 = sphi %s2908_s22, %s3425_s22  }
  0x26   : > { %3381 = sst [smem:[#allocation11_spill]] %s2760_s2  ;;  %s2310_s28 = sadd.s32 4294967294, %s2784_s4  }
  0x27   : > { %3382 = sst [smem:[#allocation12_spill]] %s2764_s23  ;;  %s47_s29 = sadd.s32 1, %s2776_s3 }
  0x28   : > { %3383 = sst [smem:[#allocation13_spill]] %s2768_s24  ;;  %s50_s0 = sadd.s32 1, %s2780_s26 }
  0x29   : > { %3384 = sst [smem:[#allocation14_spill]] %s2772_s25  ;;  %p48_p5 = scmp.ge.s32.totalorder %s47_s29, 2 }
  0x2a   : > { %3385 = sst [smem:[#allocation15_spill]] %s2776_s3  ;;  %s508_s30 = sadd.s32 1, %s2764_s23 }
  0x2b   : > { %3386 = sst [smem:[#allocation16_spill]] %s2780_s26  ;;  %s3433_s29 = smov (%p48_p5, %s47_s29), 0 }
  0x2c   : > { %3387 = sst [smem:[#allocation17_spill]] %s2784_s4  ;;  %s3435_s0 = smov (!%p48_p5, %s50_s0), %s2780_s26 }
  0x2d   : > { %3388 = sst [smem:[#allocation18_spill]] %s3433_s29  ;;  %p52_p6 = scmp.ge.s32.totalorder %s3435_s0, 2 }
  0x2e   : > { %p518_p7 = scmp.ne.s32.totalorder %s2764_s23, %s2760_s2  ;;  %p519_p8 = scmp.eq.s32.totalorder %s2309_s27, 3 }
  0x2f   : > { %s3437_s0 = smov (%p52_p6, %s3435_s0), 0  ;;  %p524_p9 = scmp.ne.s32.totalorder %s2760_s2, %s2756_s22 }
  0x30   : > { %3389 = sst [smem:[#allocation19_spill]] %s3437_s0  ;;  %s503_s20 = ssub.s32 %s2780_s26, %s3437_s0 }
  0x31   : > { %p2964_p10 = por %p519_p8, %p518_p7  ;;  %p506_p11 = scmp.eq.s32.totalorder %s503_s20, 0 }
  0x32   : > { %p525_p12 = scmp.eq.s32.totalorder %s2310_s28, 3  ;;  %p2315_p13 = scmp.ge.s32.totalorder %s2784_s4, 1 }
  0x33   : > { %s3390_s21 = scalar_select %p2964_p10, 1, 0 }
  0x34   : > { %p646_p0 = scmp.lt.s32.totalorder %s2784_s4, 5  ;;  %p2973_p1 = por %p525_p12, %p524_p9 }
  0x35   : > { %3391 = sst [smem:[#allocation20_spill]] %s3390_s21 }
  0x36   : > { %s2971_s1 = scalar_select %p506_p11, %s2764_s23, %s508_s30  }
  0x37   : > { %s3393_s29 = scalar_select %p2973_p1, 1, 0 }
  0x38   : > { %3392 = sst [smem:[#allocation21_spill]] %s2971_s1  ;;  %p647_p2 = pnand %p2315_p13, %p646_p0 }
  0x39   : > { %3394 = sst [smem:[#allocation22_spill]] %s3393_s29  ;;  %s3356_s27 = sand.u32 (!%p647_p2), 1, %s2760_s2  }
  0x3a   : > { %650 = sbr.rel (%p647_p2) target bundleno = 3551 (0xddf), region = 92  ;;  %p744_p3 = scmp.lt.s32.totalorder (!%p647_p2), %s2772_s25, 1 }
  0x3b   : > { %s2981_s28 = sshll.u32 (!%p647_p2), %s3356_s27, 3  ;;  %p749_p4 = scmp.lt.s32.totalorder (!%p647_p2), %s2768_s24, 1 }
  0x3c   : > { %s3395_s27 = sld [smem:[#allocation24_spill]] (!%p647_p2)  ;;  %s743_s17 = scalar_lea.vmem (!%p647_p2), [#allocation6], %s2981_s28 }
  0x3d   : > { %s3397_s7 = sld [smem:[#allocation29_spill]] (!%p647_p2) }
  0x3e   : > { %s3398_s9 = sld [smem:[#allocation30_spill]] (!%p647_p2) }
  0x3f   : > { %s745_s30 = scalar_select %p744_p3, %s2772_s25, 1 }
  0x40   : > { %s2988_s20 = scalar_select %p749_p4, %s2768_s24, 1 }
  0x41   : > { %s2390_s0 = sshll.u32 %s745_s30, 4  ;;  %s3399_s18 = sld [smem:[#allocation13_spill]] }
  0x42   : > { %s2993_s1 = scalar_lea.vmem %s3395_s27, %s2390_s0  ;;  %s2391_s2 = sshll.u32 %s2988_s20, 4 }
  0x43   : > { %s3007_s25 = scalar_lea.vmem %s3397_s7, %s2391_s2  ;;  %s3033_s30 = scalar_lea.vmem %s3345_s13, %s2391_s2 }
  0x44   : > { %s3016_s27 = scalar_lea.vmem %s3398_s9, %s2391_s2  ;;  %s784_s3 = scalar_lea.vmem %s3346_s14, %s2988_s20 }
  0x45   : > { %s2394_s9 = sshll.u32 %s2988_s20, 6  ;;  %s792_s19 = scalar_lea.vmem %s3348_s16, %s2988_s20 }
  0x46   : > { %s3047_s22 = scalar_lea.vmem %s3347_s15, %s2394_s9 }
  0x47   : > { %p2327_p5 = scmp.ne.s32.totalorder %s3399_s18, 0 }
  0x48   : > { %s3400_s24 = sld [smem:[#allocation25_spill]] (!%p2327_p5) }
  0x49   : > { %800 = sbr.rel (%p2327_p5) target bundleno = 313 (0x139), region = 96  ;;  %s3402_s26 = sld [smem:[#allocation14_spill]] (!%p2327_p5) }
  0x4a   : > { %s3403_s23 = sld [smem:[#allocation26_spill]] (!%p2327_p5) }
  0x4b   : > { %s3404_s9 = sld [smem:[#allocation27_spill]] (!%p2327_p5) }
  0x4e   : > { %s3401_s7 = smov %s3400_s24  ;;  %v2624_v0 = vld [vmem:[%s3400_s24 + $0x78] sm:$0xff]   ;;  %v802_v11 = vld [vmem:[%s2993_s1 + $0x8] sm:$0xff]  ;;  %v801_v18 = vld [vmem:[%s2993_s1] sm:$0xff]  ;;  %v984_v20 = vlaneseq  ;;  %v2787_v23 = vmov -1e+09   ;;  %vm990_vm1 = vcmask 64512  }
  0x4f   : > { %v2625_v1 = vld [vmem:[%s3401_s7 + $0x38] sm:$0xff]   ;;  %2395 = vmatprep.subr.bf16.mxu0 %v2624_v0  ;;  %v2626_v2 = vld [vmem:[%s3401_s7 + $0x70] sm:$0xff]   ;;  %v2628_v4 = vld [vmem:[%s3401_s7 + $0x68] sm:$0xff]   ;;  %v836_v12 = vpack.c.bf16 %v802_v11, %v802_v11  ;;  %v835_v19 = vpack.c.bf16 %v801_v18, %v801_v18  ;;  %s986_s2 = sld [smem:[#allocation5 + %s3402_s26]]  ;;  %vm982_vm2 = vcmask 261120  }
  0x50   : > { %2396 = vmatpush3.bf16.msra.mxu0 %v2625_v1  ;;  %v2627_v3 = vld [vmem:[%s3401_s7 + $0x30] sm:$0xff]   ;;  %v2629_v5 = vld [vmem:[%s3401_s7 + $0x28] sm:$0xff]   ;;  %v2630_v6 = vld [vmem:[%s3401_s7 + $0x60] sm:$0xff]   ;;  %v985_v21 = vand.u32 127, %v984_v20 }
  0x51   : > { %2397 = vmatprep.subr.bf16.mxu0 %v2626_v2  ;;  %v2631_v7 = vld [vmem:[%s3401_s7 + $0x20] sm:$0xff]   ;;  %v2632_v8 = vld [vmem:[%s3401_s7 + $0x58] sm:$0xff]   ;;  %v2634_v10 = vld [vmem:[%s3401_s7 + $0x50] sm:$0xff]   ;;  %972 = vmatprep.mubr.bf16.mxu0 %v836_v12 }
  0x52   : > { %v2633_v9 = vld [vmem:[%s3401_s7 + $0x18] sm:$0xff]   ;;  %v2635_v13 = vld [vmem:[%s3401_s7 + $0x10] sm:$0xff]   ;;  %v2636_v14 = vld [vmem:[%s3401_s7 + $0x48] sm:$0xff]  }
  0x53   : > { %v2637_v15 = vld [vmem:[%s3401_s7 + $0x8] sm:$0xff]   ;;  %v2638_v16 = vld [vmem:[%s3401_s7 + $0x40] sm:$0xff]  }
  0x54   : > { %2398 = vmatpush3.bf16.msra.mxu0 %v2627_v3  ;;  %v2639_v17 = vld [vmem:[%s3401_s7] sm:$0xff]  }
  0x55   : > { %2399 = vmatprep.subr.bf16.mxu0 %v2628_v4  ;;  %v987_v22 = vstv %s986_s2  ;;  %v2328_v26 = vld [vmem:[%s3403_s23] ss:$0 sm:$0xff] }
  0x56   : > { %vm988_vm0 = vcmp.lt.s32.totalorder %v985_v21, %v987_v22  ;;  %v980_v29 = vld [vmem:[%s3404_s9] sm:$0xff] }
  0x57   : > { %v989_v24 = vsel %vm988_vm0, 0.0, %v2787_v23 }
  0x58   : > { %2400 = vmatpush3.bf16.msra.mxu0 %v2629_v5  ;;  %991 = vst.msk [vmem:[#allocation3] sm:$0xff] %vm990_vm1, %v989_v24 }
  0x59   : > { %2401 = vmatprep.subr.bf16.mxu0 %v2630_v6 }
  0x5c   : > { %2402 = vmatpush3.bf16.msra.mxu0 %v2631_v7 }
  0x5d   : > { %2403 = vmatprep.subr.bf16.mxu0 %v2632_v8 }
  0x60   : > { %2404 = vmatpush3.bf16.msra.mxu0 %v2633_v9 }
  0x61   : > { %2405 = vmatprep.subr.bf16.mxu0 %v2634_v10 }
  0x64   : > { %2406 = vmatpush3.bf16.msra.mxu0 %v2635_v13 }
  0x65   : > { %2407 = vmatprep.subr.bf16.mxu0 %v2636_v14 }
  0x68   : > { %2408 = vmatpush3.bf16.msra.mxu0 %v2637_v15 }
  0x69   : > { %2409 = vmatprep.subr.bf16.mxu0 %v2638_v16 }
  0x6c   : > { %2410 = vmatpush3.bf16.msra.mxu0 %v2639_v17 }
  0x6f   : > { %973 = vmatmul.mubr.bf16.vlgmr.msra.gmra.mxu0 %v835_v19 }
 0x12f   : > { %v2411_v25 = vpop.f32.mrf.mxu0 }
 0x131   : > { %v2412_v27 = vpop.f32.mrf.mxu0 }
 0x132   : > { %v2413_v28 = vadd.f32 %v2412_v27, %v2411_v25 }
 0x133   : > { %v2414_v30 = vpop.f32.mrf.mxu0 }
 0x134   : > { %v975_v31 = vadd.f32 %v2413_v28, %v2328_v26 }
 0x135   : > { %v2415_v32 = vpop.f32.mrf.mxu0 }
 0x136   : > { %v981_v33 = vadd.f32 %v980_v29, %v975_v31 }
 0x138   : > { %983 = vst.msk [vmem:[#allocation2] sm:$0xff] %vm982_vm2, %v981_v33 }
 0x139 PF: > { %vm996_vm3 = vcmask 261120   ;;  %v2640_v41 = vld [vmem:[%s3007_s25 + $0x8] sm:$0xff]   ;;  %v2788_v42 = vmov 0.0   ;;  %vm2789_vm4 = vmmov 0   ;;  %v2641_v43 = vld [vmem:[%s3007_s25] sm:$0xff]   ;;  %s3405_s25 = scalar_lea.vmem %s3337_s5, %s2988_s20  ;;  %s3406_s6 = sld [smem:[#allocation28_spill]] }
 0x13a   : > { %2451 = vmatprep.subr.bf16.mxu0 %v2788_v42  ;;  %2455 = vmatprep.mubr.msk.bf16.mxu0 %vm2789_vm4, %v2788_v42  ;;  %v2345_v48 = vld [vmem:[%s3405_s25] ss:$0 sm:$0xff]  ;;  %s3408_s23 = scalar_lea.vmem %s3340_s8, %s2988_s20  ;;  %s2790_s1 = smov 64   ;;  %vm1095_vm5 = vcmask 64512   ;;  %v3154_v63 = vld [vmem:[#allocation3] sm:$0xff]  ;;  %vm1773_vm6 = vcmask 130048  }
 0x13b   : > { %2452 = vmatpush3.bf16.msra.mxu0 %v2640_v41  ;;  %2464 = vmatprep.subr.mxu1 %v2788_v42  ;;  %v2347_v54 = vld [vmem:[%s3408_s23] ss:$0 sm:$0xff]  ;;  %s2791_s29 = smov 96   ;;  %s2792_s9 = smov 88   ;;  %vm1775_vm7 = vcmask 195584  }
 0x13c   : > { %2453 = vmatprep.subr.bf16.mxu0 %v2788_v42  ;;  %2466 = vmatprep.mubr.msk.f32.mxu1 %vm2789_vm4, %v2788_v42  ;;  %s2793_s26 = smov 80   ;;  %s2794_s21 = smov 120  }
 0x13d   : > { %s2795_s25 = smov 112   ;;  %s2796_s4 = smov 72  }
 0x13e   : > { %s2797_s18 = smov 104   ;;  %s2800_s24 = smov 56  }
 0x13f   : > { %v3108_v34 = vld [vmem:[#allocation2] sm:$0xff]  ;;  %2454 = vmatpush3.bf16.msra.mxu0 %v2641_v43  ;;  %s3407_s2 = scalar_lea.vmem %s3406_s6, %s2988_s20  ;;  %s2798_s6 = smov 48  }
 0x140   : > { %v997_v35 = vsel %vm996_vm3, %v3108_v34, 0.0  ;;  %2459 = vmatprep.subr.mxu0 %v2788_v42  ;;  %v2346_v50 = vld [vmem:[%s3407_s2] ss:$0 sm:$0xff]  ;;  %s2799_s2 = smov 40   ;;  %s2801_s0 = smov 8  }
 0x141   : > { %998 = vadd.xlane.f32.xlu0 %v997_v35  ;;  %s2802_s23 = smov 16  }
 0x1ca   : > { %v999_v36 = vpop.xlane.xlu0 %998 }
 0x1cb   : > { %v1001_v37 = vmul.f32 0.03125, %v999_v36 }
 0x1cd   : > { %v1002_v38 = vsub.f32 %v3108_v34, %v1001_v37 }
 0x1cf   : > { %v1003_v39 = vmul.f32 %v1002_v38, %v1002_v38 }
 0x1d1   : > { %v1004_v40 = vsel %vm996_vm3, %v1003_v39, 0.0 }
 0x1d2   : > { %1005 = vadd.xlane.f32.xlu0 %v1004_v40 }
 0x25b   : > { %v1006_v44 = vpop.xlane.xlu0 %1005 }
 0x25c   : > { %v1007_v45 = vmul.f32 0.03125, %v1006_v44 }
 0x25e   : > { %v1008_v46 = vadd.f32 1e-06, %v1007_v45 }
 0x260   : > { %2654 = vrsqrt.f32 %v1008_v46 }
 0x26d   : > { %v2655_v47 = vpop.eup %2654 }
 0x26e   : > { %v1010_v49 = vmul.f32 %v2655_v47, %v1002_v38 }
 0x270   : > { %v1017_v51 = vmul.f32 %v2345_v48, %v1010_v49 }
 0x272   : > { %v1024_v52 = vadd.f32 %v2346_v50, %v1017_v51 }
 0x274   : > { %v1029_v53 = vpack.c.bf16 %v1024_v52, %v1024_v52 }
 0x276   : > { %2456 = vmatmul.mubr.msk.bf16.vlgmr.msra.gmra.mxu0 %vm996_vm3, %v1029_v53 }
 0x277   : > { %2461 = vmatprep.mubr.msk.f32.mxu0 %vm2789_vm4, %v2788_v42 }
 0x336   : > { %v1086_v55 = vpop.f32.mrf.mxu0 }
 0x337   : > { %v3142_v56 = vadd.f32 %v2347_v54, %v1086_v55 }
 0x338   : > { %v2457_v57 = vpop.f32.mrf.mxu0 }
 0x339   : > { %1183 = vrot.lane.b32.xlu0 %v3142_v56, %s2790_s1  ;;  %1093 = vrot.lane.b32.xlu1 %v3142_v56, %s2791_s29  ;;  %s2803_s1 = smov 24  }
 0x33a   : > { %v1089_v58 = vpop.f32.mrf.mxu0 }
 0x33c   : > { %v2458_v59 = vpop.f32.mrf.mxu0 }
 0x33d   : > { %1261 = vrot.lane.b32.xlu0 %v3142_v56, %s2792_s9  ;;  %s3409_s9 = scalar_lea.vmem %s3342_s10, %s2988_s20 }
 0x3ab   : > { %v1184_v60 = vpop.permute.xlu0 %1183  ;;  %v1094_v61 = vpop.permute.xlu1 %1093 }
 0x3ac   : > { %2460 = vmatpush3.xpose.msk.msra.mxu0 %vm1095_vm5, %v1094_v61  ;;  %2465 = vmatpush3.msra.mxu1 %v1184_v60 }
 0x3ad   : > { %2469 = vmatprep.subr.mxu1 %v2788_v42  ;;  %2474 = vmatprep.subr.mxu0 %v2788_v42 }
 0x3af   : > { %2462 = vmatmul.mubr.msk.f32.vlgmr.msra.gmra.mxu0 %vm1095_vm5, %v3142_v56  ;;  %v1262_v9 = vpop.permute.xlu0 %1261 }
 0x3b0   : > { %2476 = vmatprep.mubr.msk.f32.mxu0 %vm2789_vm4, %v2788_v42 }
 0x46f   : > { %v1166_v62 = vpop.f32.mrf.mxu0 }
 0x470   : > { %v1170_v0 = vmul.f32 0.35355338, %v1166_v62 }
 0x471   : > { %v2463_v1 = vpop.f32.mrf.mxu0 }
 0x472   : > { %v1171_v2 = vadd.f32 %v1170_v0, %v3154_v63  ;;  %v2642_v0 = vld [vmem:[%s3016_s27 + $0x8] sm:$0xff]   ;;  %v2643_v1 = vld [vmem:[%s3016_s27] sm:$0xff]   ;;  %s3414_s27 = sld [smem:[#allocation32_spill]] (!%p749_p4) }
 0x474   : > { %v1172_v3 = vsel %vm1095_vm5, %v1171_v2, -inf }
 0x475   : > { %1173 = vmax.xlane.f32.xlu1 %v1172_v3 }
 0x486   : > { %1428 = vrot.lane.b32.xlu1 %v3142_v56, %s2793_s26 }
 0x4fe   : > { %v1174_v4 = vpop.xlane.xlu1 %1173 }
 0x4ff   : > { %v1175_v5 = vsub.f32 %v1171_v2, %v1174_v4 }
 0x501   : > { %v1176_v6 = vmul.f32 1.442695, %v1175_v5 }
 0x502   : > { %v1429_v15 = vpop.permute.xlu1 %1428 }
 0x503   : > { %2656 = vpow2.f32 %v1176_v6 }
 0x510   : > { %v2657_v7 = vpop.eup %2656 }
 0x511   : > { %v1178_v8 = vsel %vm1095_vm5, %v2657_v7, 0.0 }
 0x512   : > { %1179 = vadd.xlane.f32.xlu0 %v1178_v8 }
 0x528   : > { %1259 = vrot.lane.b32.xlu0 %v3142_v56, %s2794_s21 }
 0x52c   : > { %1426 = vrot.lane.b32.xlu0 %v3142_v56, %s2795_s25  ;;  %s3410_s25 = scalar_lea.vmem %s3343_s11, %s2988_s20 }
 0x530   : > { %1595 = vrot.lane.b32.xlu0 %v3142_v56, %s2796_s4 }
 0x534   : > { %1593 = vrot.lane.b32.xlu0 %v3142_v56, %s2797_s18 }
 0x59b   : > { %v1180_v10 = vpop.xlane.xlu0 %1179 }
 0x59c   : > { %2658 = vrcp.f32 %v1180_v10 }
 0x59f   : > { %v1260_v11 = vpop.permute.xlu0 %1259 }
 0x5a3   : > { %v1427_v14 = vpop.permute.xlu0 %1426 }
 0x5a7   : > { %v1596_v16 = vpop.permute.xlu0 %1595 }
 0x5a9   : > { %v2659_v12 = vpop.eup %2658 }
 0x5aa   : > { %v1182_v13 = vmul.f32 %v2659_v12, %v2657_v7 }
 0x5ab   : > { %v1594_v17 = vpop.permute.xlu0 %1593 }
 0x5ac   : > { %2467 = vmatmul.mubr.msk.f32.vlgmr.msra.gmra.mxu1 %vm1095_vm5, %v1182_v13 }
 0x5ad   : > { %2470 = vmatpush3.xpose.msk.msra.mxu1 %vm1095_vm5, %v1262_v9  ;;  %2471 = vmatprep.mubr.msk.f32.mxu1 %vm2789_vm4, %v2788_v42 }
 0x5ae   : > { %2479 = vmatprep.subr.mxu1 %v2788_v42 }
 0x5b0   : > { %2472 = vmatmul.mubr.msk.f32.vlgmr.msra.gmra.mxu1 %vm1095_vm5, %v1260_v11 }
 0x5b1   : > { %2480 = vmatpush3.xpose.msk.msra.mxu1 %vm1095_vm5, %v1429_v15  ;;  %2481 = vmatprep.mubr.msk.f32.mxu1 %vm2789_vm4, %v2788_v42 }
 0x5b2   : > { %2489 = vmatprep.subr.mxu1 %v2788_v42 }
 0x5b4   : > { %2482 = vmatmul.mubr.msk.f32.vlgmr.msra.gmra.mxu1 %vm1095_vm5, %v1427_v14 }
 0x5b5   : > { %2490 = vmatpush3.xpose.msk.msra.mxu1 %vm1095_vm5, %v1596_v16  ;;  %2491 = vmatprep.mubr.msk.f32.mxu1 %vm2789_vm4, %v2788_v42  ;;  %v2366_v16 = vld [vmem:[%s3409_s9] ss:$0 sm:$0xff] }
 0x5b6   : > { %2515 = vmatprep.subr.bf16.mxu1 %v2788_v42 }
 0x5b8   : > { %2492 = vmatmul.mubr.msk.f32.vlgmr.msra.gmra.mxu1 %vm1095_vm5, %v1594_v17 }
 0x5b9   : > { %2531 = vmatprep.mubr.msk.bf16.mxu1 %vm2789_vm4, %v2788_v42 }
 0x66c   : > { %v3182_v18 = vpop.f32.mrf.mxu1 }
 0x66e   : > { %v2468_v19 = vpop.f32.mrf.mxu1 }
 0x670   : > { %v1333_v20 = vpop.f32.mrf.mxu1 }
 0x671   : > { %v1337_v21 = vmul.f32 0.35355338, %v1333_v20 }
 0x672   : > { %v2473_v22 = vpop.f32.mrf.mxu1 }
 0x673   : > { %v1338_v23 = vadd.f32 %v1337_v21, %v3154_v63 }
 0x674   : > { %v1500_v24 = vpop.f32.mrf.mxu1 }
 0x675   : > { %v1504_v25 = vmul.f32 0.35355338, %v1500_v24  ;;  %v1339_v26 = vsel %vm1095_vm5, %v1338_v23, -inf }
 0x676   : > { %1340 = vmax.xlane.f32.xlu0 %v1339_v26  ;;  %v2483_v27 = vpop.f32.mrf.mxu1 }
 0x677   : > { %v1505_v28 = vadd.f32 %v1504_v25, %v3154_v63 }
 0x678   : > { %v1667_v29 = vpop.f32.mrf.mxu1 }
 0x679   : > { %v1671_v30 = vmul.f32 0.35355338, %v1667_v29  ;;  %v1506_v31 = vsel %vm1095_vm5, %v1505_v28, -inf }
 0x67a   : > { %1507 = vmax.xlane.f32.xlu1 %v1506_v31  ;;  %v2493_v32 = vpop.f32.mrf.mxu1 }
 0x67b   : > { %v1672_v33 = vadd.f32 %v1671_v30, %v3154_v63 }
 0x67d   : > { %v1673_v35 = vsel %vm1095_vm5, %v1672_v33, -inf }
 0x67e   : > { %1674 = vmax.xlane.f32.xlu0 %v1673_v35 }
 0x68b   : > { %1517 = vrot.lane.b32.xlu1 %v3142_v56, %s2798_s6 }
 0x6ff   : > { %v1341_v36 = vpop.xlane.xlu0 %1340 }
 0x700   : > { %v1342_v37 = vsub.f32 %v1338_v23, %v1341_v36 }
 0x702   : > { %v1343_v38 = vmul.f32 1.442695, %v1342_v37 }
 0x703   : > { %v1508_v39 = vpop.xlane.xlu1 %1507 }
 0x704   : > { %2660 = vpow2.f32 %v1343_v38  ;;  %v1509_v40 = vsub.f32 %v1505_v28, %v1508_v39  ;;  %v2645_v28 = vld [vmem:[%s3033_s30] sm:$0xff]  }
 0x706   : > { %v1510_v41 = vmul.f32 1.442695, %v1509_v40  ;;  %v2646_v40 = vld [vmem:[%s3047_s22 + $0x38] sm:$0xff]  }
 0x707   : > { %v1675_v43 = vpop.xlane.xlu0 %1674  ;;  %v1518_v53 = vpop.permute.xlu1 %1517  ;;  %2516 = vmatpush3.bf16.msra.mxu1 %v2646_v40 }
 0x708   : > { %2662 = vpow2.f32 %v1510_v41  ;;  %v1676_v44 = vsub.f32 %v1672_v33, %v1675_v43  ;;  %v2367_v33 = vld [vmem:[%s3410_s25] ss:$0 sm:$0xff]  ;;  %2517 = vmatprep.subr.bf16.mxu1 %v2788_v42  ;;  %v2647_v41 = vld [vmem:[%s3047_s22 + $0x30] sm:$0xff]   ;;  %v2648_v43 = vld [vmem:[%s3047_s22 + $0x28] sm:$0xff]  }
 0x70a   : > { %v1677_v45 = vmul.f32 1.442695, %v1676_v44  ;;  %v2649_v44 = vld [vmem:[%s3047_s22 + $0x20] sm:$0xff]  }
 0x70b   : > { %2518 = vmatpush3.bf16.msra.mxu1 %v2647_v41 }
 0x70c   : > { %2664 = vpow2.f32 %v1677_v45  ;;  %2519 = vmatprep.subr.bf16.mxu1 %v2788_v42  ;;  %v2650_v45 = vld [vmem:[%s3047_s22 + $0x18] sm:$0xff]  }
 0x70f   : > { %2520 = vmatpush3.bf16.msra.mxu1 %v2648_v43 }
 0x710   : > { %2521 = vmatprep.subr.bf16.mxu1 %v2788_v42 }
 0x711   : > { %v2661_v46 = vpop.eup %2660 }
 0x712   : > { %v1345_v47 = vsel %vm1095_vm5, %v2661_v46, 0.0 }
 0x713   : > { %1346 = vadd.xlane.f32.xlu0 %v1345_v47  ;;  %2522 = vmatpush3.bf16.msra.mxu1 %v2649_v44  ;;  %v2652_v47 = vld [vmem:[%s3047_s22 + $0x8] sm:$0xff]  }
 0x714   : > { %2523 = vmatprep.subr.bf16.mxu1 %v2788_v42 }
 0x715   : > { %v2663_v48 = vpop.eup %2662 }
 0x716   : > { %v1512_v49 = vsel %vm1095_vm5, %v2663_v48, 0.0 }
 0x717   : > { %1513 = vadd.xlane.f32.xlu0 %v1512_v49  ;;  %2524 = vmatpush3.bf16.msra.mxu1 %v2650_v45  ;;  %v2369_v49 = vld [vmem:[%s784_s3] ss:$0 sm:$0xff] }
 0x718   : > { %2525 = vmatprep.subr.bf16.mxu1 %v2788_v42 }
 0x719   : > { %v2665_v50 = vpop.eup %2664 }
 0x71a   : > { %v1679_v51 = vsel %vm1095_vm5, %v2665_v50, 0.0 }
 0x71b   : > { %1680 = vadd.xlane.f32.xlu1 %v1679_v51 }
 0x72c   : > { %1684 = vrot.lane.b32.xlu1 %v3142_v56, %s2799_s2 }
 0x72d   : > { %1350 = vrot.lane.b32.xlu0 %v3142_v56, %s2800_s24 }
 0x79c   : > { %v1347_v52 = vpop.xlane.xlu0 %1346 }
 0x79d   : > { %2666 = vrcp.f32 %v1347_v52 }
 0x7a0   : > { %v1514_v54 = vpop.xlane.xlu0 %1513 }
 0x7a1   : > { %2668 = vrcp.f32 %v1514_v54 }
 0x7a4   : > { %v1681_v55 = vpop.xlane.xlu1 %1680  ;;  %v1351_v57 = vpop.permute.xlu0 %1350 }
 0x7a5   : > { %2670 = vrcp.f32 %v1681_v55  ;;  %2475 = vmatpush3.msra.mxu0 %v1351_v57 }
 0x7a6   : > { %2484 = vmatprep.subr.mxu0 %v2788_v42 }
 0x7a8   : > { %v1685_v61 = vpop.permute.xlu1 %1684 }
 0x7aa   : > { %v2667_v58 = vpop.eup %2666 }
 0x7ab   : > { %v1349_v59 = vmul.f32 %v2667_v58, %v2661_v46  ;;  %v2651_v46 = vld [vmem:[%s3047_s22 + $0x10] sm:$0xff]  }
 0x7ac   : > { %2526 = vmatpush3.bf16.msra.mxu1 %v2651_v46 }
 0x7ad   : > { %2477 = vmatmul.mubr.msk.f32.vlgmr.msra.gmra.mxu0 %vm1095_vm5, %v1349_v59  ;;  %2527 = vmatprep.subr.bf16.mxu1 %v2788_v42 }
 0x7ae   : > { %v2669_v60 = vpop.eup %2668  ;;  %2485 = vmatpush3.msra.mxu0 %v1518_v53  ;;  %2486 = vmatprep.mubr.msk.f32.mxu0 %vm2789_vm4, %v2788_v42 }
 0x7af   : > { %2494 = vmatprep.subr.mxu0 %v2788_v42  ;;  %v1516_v56 = vmul.f32 %v2669_v60, %v2663_v48  ;;  %v2653_v48 = vld [vmem:[%s3047_s22] sm:$0xff]  }
 0x7b0   : > { %2528 = vmatpush3.bf16.msra.mxu1 %v2652_v47 }
 0x7b1   : > { %2487 = vmatmul.mubr.msk.f32.vlgmr.msra.gmra.mxu0 %vm1095_vm5, %v1516_v56  ;;  %2529 = vmatprep.subr.bf16.mxu1 %v2788_v42 }
 0x7b2   : > { %v2671_v62 = vpop.eup %2670  ;;  %2495 = vmatpush3.msra.mxu0 %v1685_v61  ;;  %2496 = vmatprep.mubr.msk.f32.mxu0 %vm2789_vm4, %v2788_v42 }
 0x7b3   : > { %v1683_v63 = vmul.f32 %v2671_v62, %v2665_v50  ;;  %2499 = vmatprep.subr.bf16.mxu0 %v2788_v42 }
 0x7b4   : > { %2530 = vmatpush3.bf16.msra.mxu1 %v2653_v48 }
 0x7b5   : > { %2497 = vmatmul.mubr.msk.f32.vlgmr.msra.gmra.mxu0 %vm1095_vm5, %v1683_v63 }
 0x7b6   : > { %2503 = vmatprep.mubr.msk.bf16.mxu0 %vm2789_vm4, %v2788_v42  ;;  %2500 = vmatpush3.bf16.msra.mxu0 %v2642_v0 }
 0x7b7   : > { %2501 = vmatprep.subr.bf16.mxu0 %v2788_v42 }
 0x7ba   : > { %2502 = vmatpush3.bf16.msra.mxu0 %v2643_v1  ;;  %v2381_v1 = vld [vmem:[%s792_s19] ss:$0 sm:$0xff] }
 0x7bb   : > { %2507 = vmatprep.subr.bf16.mxu0 %v2788_v42 }
 0x86d   : > { %v1422_v2 = vpop.f32.mrf.mxu0 }
 0x86e   : > { %1761 = vrot.lane.b32.xlu1 %v1422_v2, %s2801_s0  ;;  %s3413_s0 = sld [smem:[#allocation31_spill]] (!%p749_p4) }
 0x86f   : > { %v2478_v3 = vpop.f32.mrf.mxu0 }
 0x871   : > { %v1589_v4 = vpop.f32.mrf.mxu0 }
 0x872   : > { %1765 = vrot.lane.b32.xlu0 %v1589_v4, %s2802_s23 }
 0x873   : > { %v2488_v5 = vpop.f32.mrf.mxu0 }
 0x875   : > { %v1756_v6 = vpop.f32.mrf.mxu0 }
 0x876   : > { %1769 = vrot.lane.b32.xlu1 %v1756_v6, %s2803_s1 }
 0x877   : > { %v2498_v7 = vpop.f32.mrf.mxu0 }
 0x8e0   : > { %v1762_v8 = vpop.permute.xlu1 %1761 }
 0x8e1   : > { %v1772_v10 = vsel %vm1095_vm5, %v3182_v18, %v1762_v8 }
 0x8e4   : > { %v1766_v9 = vpop.permute.xlu0 %1765 }
 0x8e5   : > { %v1774_v11 = vsel %vm1773_vm6, %v1772_v10, %v1766_v9 }
 0x8e8   : > { %v1770_v12 = vpop.permute.xlu1 %1769 }
 0x8e9   : > { %v1776_v13 = vsel %vm1775_vm7, %v1774_v11, %v1770_v12 }
 0x8ea   : > { %v1781_v14 = vpack.c.bf16 %v1776_v13, %v1776_v13 }
 0x8ec   : > { %2504 = vmatmul.mubr.msk.bf16.vlgmr.msra.gmra.mxu0 %vm996_vm3, %v1781_v14 }
 0x8ed   : > { %2511 = vmatprep.mubr.msk.bf16.mxu0 %vm2789_vm4, %v2788_v42 }
 0x9ac   : > { %v1831_v15 = vpop.f32.mrf.mxu0 }
 0x9ad   : > { %v1837_v17 = vadd.f32 %v1831_v15, %v3108_v34  ;;  %v2644_v34 = vld [vmem:[%s3033_s30 + $0x8] sm:$0xff]   ;;  %s3411_s30 = scalar_lea.vmem %s3344_s12, %s2988_s20 }
 0x9ae   : > { %v2505_v18 = vpop.f32.mrf.mxu0  ;;  %2508 = vmatpush3.bf16.msra.mxu0 %v2644_v34  ;;  %v2368_v36 = vld [vmem:[%s3411_s30] ss:$0 sm:$0xff] }
 0x9af   : > { %v3223_v19 = vadd.f32 %v2366_v16, %v1837_v17  ;;  %2509 = vmatprep.subr.bf16.mxu0 %v2788_v42 }
 0x9b0   : > { %v1834_v20 = vpop.f32.mrf.mxu0 }
 0x9b1   : > { %v1848_v21 = vsel %vm996_vm3, %v3223_v19, 0.0 }
 0x9b2   : > { %1849 = vadd.xlane.f32.xlu0 %v1848_v21  ;;  %v2506_v22 = vpop.f32.mrf.mxu0  ;;  %2510 = vmatpush3.bf16.msra.mxu0 %v2645_v28 }
 0xa3b   : > { %v1850_v23 = vpop.xlane.xlu0 %1849 }
 0xa3c   : > { %v1851_v24 = vmul.f32 0.03125, %v1850_v23 }
 0xa3e   : > { %v1852_v25 = vsub.f32 %v3223_v19, %v1851_v24 }
 0xa40   : > { %v1853_v26 = vmul.f32 %v1852_v25, %v1852_v25 }
 0xa42   : > { %v1854_v27 = vsel %vm996_vm3, %v1853_v26, 0.0 }
 0xa43   : > { %1855 = vadd.xlane.f32.xlu1 %v1854_v27 }
 0xacc   : > { %v1856_v29 = vpop.xlane.xlu1 %1855 }
 0xacd   : > { %v1857_v30 = vmul.f32 0.03125, %v1856_v29 }
 0xacf   : > { %v1858_v31 = vadd.f32 1e-06, %v1857_v30 }
 0xad1   : > { %2672 = vrsqrt.f32 %v1858_v31 }
 0xade   : > { %v2673_v32 = vpop.eup %2672 }
 0xadf   : > { %v1860_v35 = vmul.f32 %v2673_v32, %v1852_v25 }
 0xae1   : > { %v1867_v37 = vmul.f32 %v2367_v33, %v1860_v35 }
 0xae3   : > { %v1874_v38 = vadd.f32 %v2368_v36, %v1867_v37 }
 0xae5   : > { %v1879_v39 = vpack.c.bf16 %v1874_v38, %v1874_v38 }
 0xae7   : > { %2512 = vmatmul.mubr.msk.bf16.vlgmr.msra.gmra.mxu0 %vm996_vm3, %v1879_v39 }
 0xba7   : > { %v1936_v50 = vpop.f32.mrf.mxu0 }
 0xba8   : > { %v1937_v51 = vadd.f32 %v2369_v49, %v1936_v50 }
 0xba9   : > { %v2513_v52 = vpop.f32.mrf.mxu0 }
 0xbaa   : > { %v1943_v53 = vmul.f32 0.044715, %v1937_v51  ;;  %v1942_v42 = vmul.f32 0.5, %v1937_v51 }
 0xbab   : > { %v1939_v54 = vpop.f32.mrf.mxu0 }
 0xbac   : > { %v1944_v55 = vmul.f32 %v1943_v53, %v1937_v51 }
 0xbad   : > { %v2514_v57 = vpop.f32.mrf.mxu0 }
 0xbae   : > { %v1945_v58 = vmul.f32 %v1944_v55, %v1937_v51 }
 0xbb0   : > { %v1946_v59 = vadd.f32 %v1945_v58, %v1937_v51 }
 0xbb2   : > { %v1947_v60 = vmul.f32 0.7978846, %v1946_v59 }
 0xbb4   : > { %2674 = vtanh.f32 %v1947_v60 }
 0xbc1   : > { %v2675_v56 = vpop.eup %2674 }
 0xbc2   : > { %v1949_v61 = vadd.f32 1.0, %v2675_v56 }
 0xbc4   : > { %v1950_v62 = vmul.f32 %v1949_v61, %v1942_v42 }
 0xbc6   : > { %v1967_v63 = vpack.c.bf16 %v1950_v62, %v1950_v62 }
 0xbc8   : > { %2532 = vmatmul.mubr.bf16.vlgmr.msra.gmra.mxu1 %v1967_v63 }
 0xc88   : > { %v2050_v0 = vpop.f32.mrf.mxu1 }
 0xc89   : > { %v2056_v2 = vadd.f32 %v2050_v0, %v3223_v19 }
 0xc8a   : > { %v2533_v3 = vpop.f32.mrf.mxu1  ;;  %2069 = sbr.rel (%p749_p4) target bundleno = 3524 (0xdc4), region = 100 }
 0xc8b   : > { %v2064_v4 = vadd.f32 %v2381_v1, %v2056_v2 }
 0xc8c   : > { %v2053_v5 = vpop.f32.mrf.mxu1 }
 0xc8d   : > { %2065 = vst.msk [vmem:[#allocation2] sm:$0xff] %vm996_vm3, %v2064_v4 }
 0xc8e   : > { %v2534_v6 = vpop.f32.mrf.mxu1 }
 0xc8f   : > { %v2072_v7 = vsel %vm996_vm3, %v2064_v4, 0.0  ;;  %v2383_v17 = vld [vmem:[%s3413_s0] ss:$0 sm:$0xff] }
 0xc90   : > { %2073 = vadd.xlane.f32.xlu0 %v2072_v7  ;;  %v2384_v19 = vld [vmem:[%s3414_s27] ss:$0 sm:$0xff] }
 0xd19   : > { %v2074_v8 = vpop.xlane.xlu0 %2073 }
 0xd1a   : > { %v2075_v9 = vmul.f32 0.03125, %v2074_v8 }
 0xd1c   : > { %v2076_v10 = vsub.f32 %v2064_v4, %v2075_v9 }
 0xd1e   : > { %v2077_v11 = vmul.f32 %v2076_v10, %v2076_v10 }
 0xd20   : > { %v2078_v12 = vsel %vm996_vm3, %v2077_v11, 0.0 }
 0xd21   : > { %2079 = vadd.xlane.f32.xlu0 %v2078_v12 }
 0xdaa   : > { %v2080_v13 = vpop.xlane.xlu0 %2079 }
 0xdab   : > { %v2081_v14 = vmul.f32 0.03125, %v2080_v13 }
 0xdad   : > { %v2082_v15 = vadd.f32 1e-06, %v2081_v14 }
 0xdaf   : > { %2676 = vrsqrt.f32 %v2082_v15 }
 0xdbc   : > { %v2677_v16 = vpop.eup %2676 }
 0xdbd   : > { %v2084_v18 = vmul.f32 %v2677_v16, %v2076_v10 }
 0xdbf   : > { %v2091_v20 = vmul.f32 %v2383_v17, %v2084_v18 }
 0xdc1   : > { %v2098_v21 = vadd.f32 %v2384_v19, %v2091_v20 }
 0xdc3   : > { %2099 = vst.msk [vmem:[%s743_s17] sm:$0xff] %vm996_vm3, %v2098_v21 }
 0xdc4 PF: > { %s3415_s29 = sld [smem:[#allocation13_spill]]  ;;  %s2118_s4 = sshll.u32 %s743_s17, 4  ;;  %s2119_s4 = int_to_ptr.vmem [resolvable:$true] %s2118_s4 }
 0xdc5   : > { %s3416_s9 = sld [smem:[#allocation14_spill]]  ;;  %s2690_s0 = scalar_lea.vmem %s2119_s4, 128 }
 0xdc6   : > { %s3417_s26 = sld [smem:[#allocation11_spill]]  ;;  %p2691_p7 = scmp.ne.s32.totalorder %s2119_s4, %s2690_s0 }
 0xdc7   : > { %s3419_s22 = sld [smem:[#allocation33_spill]]  ;;  %s2804_s23 = smov [#allocation6]  }
 0xdc8   : > { %p2692_p8 = pnand %p2691_p7, %p2964_p10  ;;  %s2694_s1 = sshll.u32 %s2804_s23, 4  ;;  %s2695_s1 = int_to_ptr.vmem [resolvable:$false] %s2694_s1 }
 0xdc9   : > { %s2696_s28 = scalar_lea.vmem %s2695_s1, 256  ;;  %p2697_p11 = scmp.lt.s32.totalorder %s2119_s4, %s2695_s1 }
 0xdca   : > { %s2386_s25 = sadd.s32 4294967295, %s3415_s29  ;;  %p2693_p9 = pneg %p2692_p8 }
 0xdcb   : > { %p2109_p6 = scmp.gt.s32.totalorder %s2386_s25, 0  ;;  %p2698_p12 = scmp.lt.s32.totalorder %s2696_s28, %s2690_s0 }
 0xdcc   : > { %s3421_s24 = sand.u32 1, %s3417_s26  }
 0xdcd   : > { %s3439_s25 = smov (!%p2109_p6, %s2386_s25), 0  ;;  %s3420_s20 = smov %s3419_s22 }
 0xdce   : > { %s2114_s18 = sadd.s32 %s3416_s9, %s3439_s25  ;;  %s2101_s19 = scalar_lea.sflag [#allocation7], %s3421_s24 }
 0xdcf   : > { %s2387_s30 = sshll.u32 %s2114_s18, 7  ;;  %p2699_p13 = por %p2698_p12, %p2697_p11 }
 0xdd0   : > { %s2116_s3 = scalar_lea.hbm %s3419_s22, %s2387_s30 }
 0xdd1   : > { %p2700_p0 = pnand %p2699_p13, %p2693_p9 }
 0xdd3   : > { %2703 = shalt.err (!%p2700_p0)
}
 0xdd4   : > { %s2704_s17 = scalar_lea.hbm %s2116_s3, 128  ;;  %s2708_s9 = scalar_lea.hbm %s3420_s20, 256 }
 0xdd5   : > { %p2705_p2 = scmp.ne.s32.totalorder %s2116_s3, %s2704_s17  ;;  %p2709_p5 = scmp.lt.s32.totalorder %s2116_s3, %s3420_s20 }
 0xdd6   : > { %p2710_p6 = scmp.lt.s32.totalorder %s2708_s9, %s2704_s17 }
 0xdd7   : > { %p2706_p3 = pnand %p2705_p2, %p2964_p10 }
 0xdd8   : > { %p2711_p7 = por %p2710_p6, %p2709_p5 }
 0xdd9   : > { %p2707_p4 = pneg %p2706_p3 }
 0xddb   : > { %p2712_p8 = pnand %p2711_p7, %p2707_p4 }
 0xddd   : > { %2715 = shalt.err (!%p2712_p8)
}
 0xdde   : > { %2535 = dma.vmem_to_hbm [thread:$0]  (%p2964_p10), %s2119_s4, 128, %s2116_s3, %s2101_s19  }
 0xddf PF: > { %s3422_s18 = sld [smem:[#allocation17_spill]] }
 0xde0   : > { %s3423_s30 = sld [smem:[#allocation10_spill]] }
 0xde5   : > { %p2541_p9 = scmp.ge.s32.totalorder %s3422_s18, 2 }
 0xde6   : > { %s2130_s2 = sand.u32 1, %s3423_s30  }
 0xde7   : > { %p2538_p11 = pnand %p2541_p9, %p2973_p1  ;;  %s2131_s22 = scalar_lea.sflag [#allocation7], %s2130_s2 }
 0xde9   : > { %p2539_p12 = pneg %p2538_p11 }
 0xdeb   : > { %2751 = dma.done.wait (%p2539_p12), %s2131_s22, 128  }
 0xdec   : > { %2753 = vsyncadd (%p2539_p12), %s2131_s22, 4294967168  ;;  %s38_s4 = sadd.s32 1, %s3422_s18   ;;  %s3425_s22 = sld [smem:[#allocation11_spill]] }
 0xded   : > { %p35_p13 = scmp.ge.s32.totalorder %s38_s4, 6   ;;  %s3426_s2 = sld [smem:[#allocation12_spill]] }
 0xdee   : > { %s3427_s23 = sld [smem:[#allocation21_spill]] }
 0xdef   : > { %s3428_s24 = sld [smem:[#allocation15_spill]]  ;;  %37 = sbr.rel (!%p35_p13) target bundleno = 37 (0x25), region = 171 }
 0xdf0   : > { %s3429_s25 = sld [smem:[#allocation16_spill]] }
 0xdf1   : > { %s3430_s3 = sld [smem:[#allocation18_spill]] }
 0xdf2   : > { %s3431_s26 = sld [smem:[#allocation19_spill]] }
 0xdf4   :  { %2136 = vsyncpa [#allocation7], 1 }
 0xdf5   :  { %2138 = vsyncpa [#allocation7 + $0x1], 1 }

</bundles_post_ra>
